<compile_context>
chip_gen: v6e
topology: v6e:2x2x1
jax: 0.10.0
libtpu: 0.0.40
codegen_flags: <defaults>
</compile_context>

<pallas_src>
import functools

import jax
import jax.numpy as jnp
from jax import lax
from jax.experimental import pallas as pl
from jax.experimental.pallas import tpu as pltpu


BRANCHES = ("d1", "d2", "d4", "d8")


# ------------------------------ Pallas kernel -------------------------------

def _rfp3_kernel(x_ref, m1_ref, b_ref, r_ref, o_ref, ypad_ref, lhs_ref, *,
                 BB, H, CW, KMAX, SMAX, PADTOP, HPAD):
    # x_ref:    [BB*H, CW]        input slab (lane = c*W + w), BB batches stacked
    # m1_ref:   [CW, CW]          fused c1..c4 1x1 weights (block-Kronecker)
    # b_ref:    [1, CW]           fused c1..c4 bias (repeated along W)
    # r_ref:    [KMAX*CW, CW]     fused (vert-tap x horiz-tap x depthwise x out_conv)
    # o_ref:    [BB*H, CW]        output slab
    # ypad_ref: [BB*HPAD, CW]     vertically zero-padded y (VMEM scratch)
    # lhs_ref:  [BB*H, KMAX*CW]   lane-stacked vertically shifted windows (scratch)

    # ---- fused c1..c4 (1x1 conv + bias) on the MXU --------------------------
    y = (jnp.dot(x_ref[...], m1_ref[...], preferred_element_type=jnp.float32)
         + b_ref[...])                                              # [BB*H, CW]

    # ---- in-kernel vertical "same" padding (halo-only zeroing) --------------
    halo = jnp.zeros((PADTOP, CW), jnp.float32)
    for b in range(BB):                               # static (unrolled)
        base = b * HPAD
        ypad_ref[pl.ds(base, PADTOP), :] = halo
        ypad_ref[pl.ds(base + PADTOP + H, PADTOP), :] = halo
        ypad_ref[pl.ds(base + PADTOP, H), :] = y[b * H:(b + 1) * H, :]

    # ---- stack the KMAX vertically shifted windows along (aligned) lanes ----
    for b in range(BB):                               # static (unrolled)
        for ki in range(KMAX):
            row0 = b * HPAD + PADTOP - SMAX + ki      # static sublane offset
            lhs_ref[pl.ds(b * H, H), pl.ds(ki * CW, CW)] = (
                ypad_ref[pl.ds(row0, H), :])

    # ---- ONE MXU matmul = all 4 depthwise convs + all 4 out_convs + residual
    o_ref[...] = (jnp.dot(lhs_ref[...], r_ref[...],
                          preferred_element_type=jnp.float32) + y)


# ------------------------- parameter repacking (once) ------------------------

def pack_params(params, *, C, W, shifts):
    """Restructure the PyTorch-layout parameters for the fused kernel."""
    assert C % 4 == 0
    Cq = C // 4
    SMAX = max(shifts)
    KMAX = 2 * SMAX + 1
    CW = C * W
    eye_w = jnp.eye(W, dtype=jnp.float32)

    # Fused c1..c4:  y[., o*W + w] = sum_c Wc[c, o] * x[., c*W + w] + b[o]
    wc = jnp.concatenate([params[f"c{i}_w"] for i in range(1, 5)], axis=1)    # [C, C]
    bias = jnp.concatenate([params[f"c{i}_b"] for i in range(1, 5)], axis=0)  # [C]
    m1 = jnp.einsum("co,ij->cioj", wc, eye_w).reshape(CW, CW)
    bvec = jnp.repeat(bias, W).reshape(1, CW)

    # Depthwise kernels centred into KMAX x KMAX; block-diagonal out_conv.
    dw_pad = jnp.zeros((C, KMAX, KMAX), jnp.float32)
    pblk = jnp.zeros((C, C), jnp.float32)
    for bi, (name, s) in enumerate(zip(BRANCHES, shifts)):
        K = 2 * s + 1
        off = SMAX - s
        dw_pad = dw_pad.at[bi * Cq:(bi + 1) * Cq,
                           off:off + K, off:off + K].set(params[f"{name}_dw"])
        pblk = pblk.at[bi * Cq:(bi + 1) * Cq,
                       bi * Cq:(bi + 1) * Cq].set(params[f"{name}_pw"])

    # Fold horizontal taps + depthwise weights + out_conv into one matrix:
    #   R[ki*CW + c*W + w', o*W + w] = pblk[c, o] * dw_pad[c, ki, SMAX + w' - w]
    # (source columns outside [0, W) are simply absent -> "same" padding in W).
    wprime = jnp.arange(W)[:, None]                     # w' (source column)
    wdst = jnp.arange(W)[None, :]                       # w  (destination column)
    idx = SMAX + wprime - wdst                          # [W, W]
    valid = ((idx >= 0) & (idx < KMAX)).astype(jnp.float32)
    idx_c = jnp.clip(idx, 0, KMAX - 1)
    htap = dw_pad[:, :, idx_c] * valid[None, None]      # [C, KMAX, W', W]
    R = jnp.einsum("co,ckpw->kcpow", pblk, htap)        # [KMAX, C, W', Cout, W]
    R = R.reshape(KMAX * CW, CW)

    return {"m1": m1, "bias": bvec, "r": R}


# ------------------------------ RFP_3 forward --------------------------------

def rfp3_forward(inp, packed):
    """inp: [B, C, H, W] (NCHW, matching PyTorch). Returns [B, C, H, W]."""
    B, C, H, W = inp.shape
    CW = C * W
    KMAX = packed["r"].shape[0] // CW
    SMAX = (KMAX - 1) // 2
    PADTOP = -(-SMAX // 8) * 8           # sublane-aligned vertical halo >= SMAX
    HPAD = H + 2 * PADTOP

    # >= 2 parallel grid steps when possible (v7x megacore); remaining batches
    # are folded into the block (bigger M) to amortize per-step cost on v5e/v6e.
    NB = 2 if (B >= 2 and B % 2 == 0) else B
    BB = B // NB

    # one transpose in: NCHW -> [B*H, C*W]  (H on sublanes, channels*W on lanes)
    x = jnp.transpose(inp, (0, 2, 1, 3)).reshape(B * H, CW)

    kern = functools.partial(_rfp3_kernel, BB=BB, H=H, CW=CW, KMAX=KMAX,
                             SMAX=SMAX, PADTOP=PADTOP, HPAD=HPAD)
    out = pl.pallas_call(
        kern,
        out_shape=jax.ShapeDtypeStruct((B * H, CW), jnp.float32),
        grid=(NB,),
        in_specs=[
            pl.BlockSpec((BB * H, CW), lambda i: (i, 0)),
            pl.BlockSpec((CW, CW), lambda i: (0, 0)),
            pl.BlockSpec((1, CW), lambda i: (0, 0)),
            pl.BlockSpec((KMAX * CW, CW), lambda i: (0, 0)),
        ],
        out_specs=pl.BlockSpec((BB * H, CW), lambda i: (i, 0)),
        scratch_shapes=[
            pltpu.VMEM((BB * HPAD, CW), jnp.float32),
            pltpu.VMEM((BB * H, KMAX * CW), jnp.float32),
        ],
        compiler_params=pltpu.CompilerParams(
            dimension_semantics=("parallel",)),
    )(x, packed["m1"], packed["bias"], packed["r"])

    # one transpose out: [B*H, C*W] -> NCHW (channel order = [c1|c2|c3|c4])
    return jnp.transpose(out.reshape(B, H, C, W), (0, 2, 1, 3))


# ---------------------------- pure-JAX reference -----------------------------

def rfp3_reference(inp, params):
    def conv1x1(x, w, b=None):
        y = jnp.einsum("bchw,co->bohw", x, w)
        if b is not None:
            y = y + b[None, :, None, None]
        return y

    def dwconv(x, w):
        Cq = x.shape[1]
        s = (w.shape[-1] - 1) // 2
        return lax.conv_general_dilated(
            x, w[:, None], window_strides=(1, 1), padding=[(s, s), (s, s)],
            feature_group_count=Cq,
            dimension_numbers=("NCHW", "OIHW", "NCHW"))

    outs = []
    for i, name in enumerate(BRANCHES):
        xb = conv1x1(inp, params[f"c{i + 1}_w"], params[f"c{i + 1}_b"])
        db = conv1x1(dwconv(xb, params[f"{name}_dw"]), params[f"{name}_pw"])
        outs.append(db + xb)
    return jnp.concatenate(outs, axis=1)


# ----------------------------------- main -------------------------------------

if __name__ == "__main__":
    B, C, H, W = 2, 8, 16, 16
    Cq = C // 4
    shifts = [1, 3, 5, 9]

    key = jax.random.PRNGKey(0)
    keys = jax.random.split(key, 17)

    params = {}
    k = 0
    for i in range(1, 5):
        # torch Conv2d(C, Cq, 1) weight [Cq, C, 1, 1] stored here as [Cin, Cout]
        params[f"c{i}_w"] = 0.1 * jax.random.normal(keys[k], (C, Cq), jnp.float32); k += 1
        params[f"c{i}_b"] = 0.1 * jax.random.normal(keys[k], (Cq,), jnp.float32); k += 1
    for name, s in zip(BRANCHES, shifts):
        K = 2 * s + 1
        # depthwise weight [Cq, 1, K, K] stored squeezed as [Cq, K, K]
        params[f"{name}_dw"] = 0.1 * jax.random.normal(keys[k], (Cq, K, K), jnp.float32); k += 1
        # 1x1 out_conv weight [Cq, Cq, 1, 1] stored as [Cin, Cout]
        params[f"{name}_pw"] = 0.1 * jax.random.normal(keys[k], (Cq, Cq), jnp.float32); k += 1

    inp = jax.random.normal(keys[16], (B, C, H, W), jnp.float32)

    packed = pack_params(params, C=C, W=W, shifts=shifts)   # weight prep (once)
    fwd = jax.jit(rfp3_forward)

    out = jax.block_until_ready(fwd(inp, packed))
    assert out.shape == (B, C, H, W), out.shape

    ref = jax.block_until_ready(rfp3_reference(inp, params))
    err = float(jnp.max(jnp.abs(out - ref)))
    assert err < 1e-4, f"max abs error {err}"

    print("KERNEL_OK")
</pallas_src>

<mosaic_0001>
module attributes {stable_mosaic.version = 11 : i64} {
  func.func @_rfp3_kernel(%arg0: i32, %arg1: memref<16x128xf32, #tpu.memory_space<vmem>>, %arg2: memref<128x128xf32, #tpu.memory_space<vmem>>, %arg3: memref<1x128xf32, #tpu.memory_space<vmem>>, %arg4: memref<2432x128xf32, #tpu.memory_space<vmem>>, %arg5: memref<16x128xf32, #tpu.memory_space<vmem>>, %arg6: memref<48x128xf32, #tpu.memory_space<vmem>>, %arg7: memref<16x2432xf32, #tpu.memory_space<vmem>>) attributes {dimension_semantics = [#tpu.dimension_semantics<parallel>], iteration_bounds = array<i64: 2>, scalar_prefetch = 0 : i64, scratch_operands = 2 : i64, tpu.core_type = #tpu.core_type<tc>, window_params = [{transform_indices = @transform_0, window_bounds = array<i64: 16, 128>}, {pipeline_mode = #tpu.pipeline_mode<synchronous>, transform_indices = @transform_1, window_bounds = array<i64: 128, 128>}, {pipeline_mode = #tpu.pipeline_mode<synchronous>, transform_indices = @transform_2, window_bounds = array<i64: 1, 128>}, {pipeline_mode = #tpu.pipeline_mode<synchronous>, transform_indices = @transform_3, window_bounds = array<i64: 2432, 128>}, {transform_indices = @transform_4, window_bounds = array<i64: 16, 128>}]} {
    %c0 = arith.constant 0 : index
    %c0_0 = arith.constant 0 : index
    %0 = vector.load %arg1[%c0, %c0_0] : memref<16x128xf32, #tpu.memory_space<vmem>>, vector<16x128xf32>
    %c0_1 = arith.constant 0 : index
    %c0_2 = arith.constant 0 : index
    %1 = vector.load %arg2[%c0_1, %c0_2] : memref<128x128xf32, #tpu.memory_space<vmem>>, vector<128x128xf32>
    %cst = arith.constant dense<0.000000e+00> : vector<16x128xf32>
    %2 = tpu.matmul %0, %1, %cst {dimension_numbers = #tpu.dot_dimension_numbers<[1], [0], [0], [1], [0, 0, 1, 1], [], []>} : vector<16x128xf32>, vector<128x128xf32>, vector<16x128xf32> -> vector<16x128xf32>
    %c0_3 = arith.constant 0 : index
    %c0_4 = arith.constant 0 : index
    %3 = vector.load %arg3[%c0_3, %c0_4] : memref<1x128xf32, #tpu.memory_space<vmem>>, vector<1x128xf32>
    %4 = vector.broadcast %3 : vector<1x128xf32> to vector<16x128xf32>
    %5 = arith.addf %2, %4 : vector<16x128xf32>
    %cst_5 = arith.constant 0.000000e+00 : f32
    %6 = vector.broadcast %cst_5 : f32 to vector<16x128xf32>
    %c0_6 = arith.constant 0 : index
    %c0_7 = arith.constant 0 : index
    %7 = vector.load %arg6[%c0_6, %c0_7] : memref<48x128xf32, #tpu.memory_space<vmem>>, vector<16x128xf32>
    tpu.vector_store %arg6[%c0_6, %c0_7], %6 {strides = array<i32>} : memref<48x128xf32, #tpu.memory_space<vmem>>, vector<16x128xf32>,
    %c32 = arith.constant 32 : index
    %c0_8 = arith.constant 0 : index
    %8 = vector.load %arg6[%c32, %c0_8] : memref<48x128xf32, #tpu.memory_space<vmem>>, vector<16x128xf32>
    tpu.vector_store %arg6[%c32, %c0_8], %6 {strides = array<i32>} : memref<48x128xf32, #tpu.memory_space<vmem>>, vector<16x128xf32>,
    %c16 = arith.constant 16 : index
    %c0_9 = arith.constant 0 : index
    %9 = vector.load %arg6[%c16, %c0_9] : memref<48x128xf32, #tpu.memory_space<vmem>>, vector<16x128xf32>
    tpu.vector_store %arg6[%c16, %c0_9], %5 {strides = array<i32>} : memref<48x128xf32, #tpu.memory_space<vmem>>, vector<16x128xf32>,
    %c7 = arith.constant 7 : index
    %c0_10 = arith.constant 0 : index
    %10 = vector.load %arg6[%c7, %c0_10] : memref<48x128xf32, #tpu.memory_space<vmem>>, vector<16x128xf32>
    %c0_11 = arith.constant 0 : index
    %c0_12 = arith.constant 0 : index
    %11 = vector.load %arg7[%c0_11, %c0_12] : memref<16x2432xf32, #tpu.memory_space<vmem>>, vector<16x128xf32>
    tpu.vector_store %arg7[%c0_11, %c0_12], %10 {strides = array<i32>} : memref<16x2432xf32, #tpu.memory_space<vmem>>, vector<16x128xf32>,
    %c8 = arith.constant 8 : index
    %c0_13 = arith.constant 0 : index
    %12 = vector.load %arg6[%c8, %c0_13] : memref<48x128xf32, #tpu.memory_space<vmem>>, vector<16x128xf32>
    %c0_14 = arith.constant 0 : index
    %c128 = arith.constant 128 : index
    %13 = vector.load %arg7[%c0_14, %c128] : memref<16x2432xf32, #tpu.memory_space<vmem>>, vector<16x128xf32>
    tpu.vector_store %arg7[%c0_14, %c128], %12 {strides = array<i32>} : memref<16x2432xf32, #tpu.memory_space<vmem>>, vector<16x128xf32>,
    %c9 = arith.constant 9 : index
    %c0_15 = arith.constant 0 : index
    %14 = vector.load %arg6[%c9, %c0_15] : memref<48x128xf32, #tpu.memory_space<vmem>>, vector<16x128xf32>
    %c0_16 = arith.constant 0 : index
    %c256 = arith.constant 256 : index
    %15 = vector.load %arg7[%c0_16, %c256] : memref<16x2432xf32, #tpu.memory_space<vmem>>, vector<16x128xf32>
    tpu.vector_store %arg7[%c0_16, %c256], %14 {strides = array<i32>} : memref<16x2432xf32, #tpu.memory_space<vmem>>, vector<16x128xf32>,
    %c10 = arith.constant 10 : index
    %c0_17 = arith.constant 0 : index
    %16 = vector.load %arg6[%c10, %c0_17] : memref<48x128xf32, #tpu.memory_space<vmem>>, vector<16x128xf32>
    %c0_18 = arith.constant 0 : index
    %c384 = arith.constant 384 : index
    %17 = vector.load %arg7[%c0_18, %c384] : memref<16x2432xf32, #tpu.memory_space<vmem>>, vector<16x128xf32>
    tpu.vector_store %arg7[%c0_18, %c384], %16 {strides = array<i32>} : memref<16x2432xf32, #tpu.memory_space<vmem>>, vector<16x128xf32>,
    %c11 = arith.constant 11 : index
    %c0_19 = arith.constant 0 : index
    %18 = vector.load %arg6[%c11, %c0_19] : memref<48x128xf32, #tpu.memory_space<vmem>>, vector<16x128xf32>
    %c0_20 = arith.constant 0 : index
    %c512 = arith.constant 512 : index
    %19 = vector.load %arg7[%c0_20, %c512] : memref<16x2432xf32, #tpu.memory_space<vmem>>, vector<16x128xf32>
    tpu.vector_store %arg7[%c0_20, %c512], %18 {strides = array<i32>} : memref<16x2432xf32, #tpu.memory_space<vmem>>, vector<16x128xf32>,
    %c12 = arith.constant 12 : index
    %c0_21 = arith.constant 0 : index
    %20 = vector.load %arg6[%c12, %c0_21] : memref<48x128xf32, #tpu.memory_space<vmem>>, vector<16x128xf32>
    %c0_22 = arith.constant 0 : index
    %c640 = arith.constant 640 : index
    %21 = vector.load %arg7[%c0_22, %c640] : memref<16x2432xf32, #tpu.memory_space<vmem>>, vector<16x128xf32>
    tpu.vector_store %arg7[%c0_22, %c640], %20 {strides = array<i32>} : memref<16x2432xf32, #tpu.memory_space<vmem>>, vector<16x128xf32>,
    %c13 = arith.constant 13 : index
    %c0_23 = arith.constant 0 : index
    %22 = vector.load %arg6[%c13, %c0_23] : memref<48x128xf32, #tpu.memory_space<vmem>>, vector<16x128xf32>
    %c0_24 = arith.constant 0 : index
    %c768 = arith.constant 768 : index
    %23 = vector.load %arg7[%c0_24, %c768] : memref<16x2432xf32, #tpu.memory_space<vmem>>, vector<16x128xf32>
    tpu.vector_store %arg7[%c0_24, %c768], %22 {strides = array<i32>} : memref<16x2432xf32, #tpu.memory_space<vmem>>, vector<16x128xf32>,
    %c14 = arith.constant 14 : index
    %c0_25 = arith.constant 0 : index
    %24 = vector.load %arg6[%c14, %c0_25] : memref<48x128xf32, #tpu.memory_space<vmem>>, vector<16x128xf32>
    %c0_26 = arith.constant 0 : index
    %c896 = arith.constant 896 : index
    %25 = vector.load %arg7[%c0_26, %c896] : memref<16x2432xf32, #tpu.memory_space<vmem>>, vector<16x128xf32>
    tpu.vector_store %arg7[%c0_26, %c896], %24 {strides = array<i32>} : memref<16x2432xf32, #tpu.memory_space<vmem>>, vector<16x128xf32>,
    %c15 = arith.constant 15 : index
    %c0_27 = arith.constant 0 : index
    %26 = vector.load %arg6[%c15, %c0_27] : memref<48x128xf32, #tpu.memory_space<vmem>>, vector<16x128xf32>
    %c0_28 = arith.constant 0 : index
    %c1024 = arith.constant 1024 : index
    %27 = vector.load %arg7[%c0_28, %c1024] : memref<16x2432xf32, #tpu.memory_space<vmem>>, vector<16x128xf32>
    tpu.vector_store %arg7[%c0_28, %c1024], %26 {strides = array<i32>} : memref<16x2432xf32, #tpu.memory_space<vmem>>, vector<16x128xf32>,
    %c16_29 = arith.constant 16 : index
    %c0_30 = arith.constant 0 : index
    %28 = vector.load %arg6[%c16_29, %c0_30] : memref<48x128xf32, #tpu.memory_space<vmem>>, vector<16x128xf32>
    %c0_31 = arith.constant 0 : index
    %c1152 = arith.constant 1152 : index
    %29 = vector.load %arg7[%c0_31, %c1152] : memref<16x2432xf32, #tpu.memory_space<vmem>>, vector<16x128xf32>
    tpu.vector_store %arg7[%c0_31, %c1152], %28 {strides = array<i32>} : memref<16x2432xf32, #tpu.memory_space<vmem>>, vector<16x128xf32>,
    %c17 = arith.constant 17 : index
    %c0_32 = arith.constant 0 : index
    %30 = vector.load %arg6[%c17, %c0_32] : memref<48x128xf32, #tpu.memory_space<vmem>>, vector<16x128xf32>
    %c0_33 = arith.constant 0 : index
    %c1280 = arith.constant 1280 : index
    %31 = vector.load %arg7[%c0_33, %c1280] : memref<16x2432xf32, #tpu.memory_space<vmem>>, vector<16x128xf32>
    tpu.vector_store %arg7[%c0_33, %c1280], %30 {strides = array<i32>} : memref<16x2432xf32, #tpu.memory_space<vmem>>, vector<16x128xf32>,
    %c18 = arith.constant 18 : index
    %c0_34 = arith.constant 0 : index
    %32 = vector.load %arg6[%c18, %c0_34] : memref<48x128xf32, #tpu.memory_space<vmem>>, vector<16x128xf32>
    %c0_35 = arith.constant 0 : index
    %c1408 = arith.constant 1408 : index
    %33 = vector.load %arg7[%c0_35, %c1408] : memref<16x2432xf32, #tpu.memory_space<vmem>>, vector<16x128xf32>
    tpu.vector_store %arg7[%c0_35, %c1408], %32 {strides = array<i32>} : memref<16x2432xf32, #tpu.memory_space<vmem>>, vector<16x128xf32>,
    %c19 = arith.constant 19 : index
    %c0_36 = arith.constant 0 : index
    %34 = vector.load %arg6[%c19, %c0_36] : memref<48x128xf32, #tpu.memory_space<vmem>>, vector<16x128xf32>
    %c0_37 = arith.constant 0 : index
    %c1536 = arith.constant 1536 : index
    %35 = vector.load %arg7[%c0_37, %c1536] : memref<16x2432xf32, #tpu.memory_space<vmem>>, vector<16x128xf32>
    tpu.vector_store %arg7[%c0_37, %c1536], %34 {strides = array<i32>} : memref<16x2432xf32, #tpu.memory_space<vmem>>, vector<16x128xf32>,
    %c20 = arith.constant 20 : index
    %c0_38 = arith.constant 0 : index
    %36 = vector.load %arg6[%c20, %c0_38] : memref<48x128xf32, #tpu.memory_space<vmem>>, vector<16x128xf32>
    %c0_39 = arith.constant 0 : index
    %c1664 = arith.constant 1664 : index
    %37 = vector.load %arg7[%c0_39, %c1664] : memref<16x2432xf32, #tpu.memory_space<vmem>>, vector<16x128xf32>
    tpu.vector_store %arg7[%c0_39, %c1664], %36 {strides = array<i32>} : memref<16x2432xf32, #tpu.memory_space<vmem>>, vector<16x128xf32>,
    %c21 = arith.constant 21 : index
    %c0_40 = arith.constant 0 : index
    %38 = vector.load %arg6[%c21, %c0_40] : memref<48x128xf32, #tpu.memory_space<vmem>>, vector<16x128xf32>
    %c0_41 = arith.constant 0 : index
    %c1792 = arith.constant 1792 : index
    %39 = vector.load %arg7[%c0_41, %c1792] : memref<16x2432xf32, #tpu.memory_space<vmem>>, vector<16x128xf32>
    tpu.vector_store %arg7[%c0_41, %c1792], %38 {strides = array<i32>} : memref<16x2432xf32, #tpu.memory_space<vmem>>, vector<16x128xf32>,
    %c22 = arith.constant 22 : index
    %c0_42 = arith.constant 0 : index
    %40 = vector.load %arg6[%c22, %c0_42] : memref<48x128xf32, #tpu.memory_space<vmem>>, vector<16x128xf32>
    %c0_43 = arith.constant 0 : index
    %c1920 = arith.constant 1920 : index
    %41 = vector.load %arg7[%c0_43, %c1920] : memref<16x2432xf32, #tpu.memory_space<vmem>>, vector<16x128xf32>
    tpu.vector_store %arg7[%c0_43, %c1920], %40 {strides = array<i32>} : memref<16x2432xf32, #tpu.memory_space<vmem>>, vector<16x128xf32>,
    %c23 = arith.constant 23 : index
    %c0_44 = arith.constant 0 : index
    %42 = vector.load %arg6[%c23, %c0_44] : memref<48x128xf32, #tpu.memory_space<vmem>>, vector<16x128xf32>
    %c0_45 = arith.constant 0 : index
    %c2048 = arith.constant 2048 : index
    %43 = vector.load %arg7[%c0_45, %c2048] : memref<16x2432xf32, #tpu.memory_space<vmem>>, vector<16x128xf32>
    tpu.vector_store %arg7[%c0_45, %c2048], %42 {strides = array<i32>} : memref<16x2432xf32, #tpu.memory_space<vmem>>, vector<16x128xf32>,
    %c24 = arith.constant 24 : index
    %c0_46 = arith.constant 0 : index
    %44 = vector.load %arg6[%c24, %c0_46] : memref<48x128xf32, #tpu.memory_space<vmem>>, vector<16x128xf32>
    %c0_47 = arith.constant 0 : index
    %c2176 = arith.constant 2176 : index
    %45 = vector.load %arg7[%c0_47, %c2176] : memref<16x2432xf32, #tpu.memory_space<vmem>>, vector<16x128xf32>
    tpu.vector_store %arg7[%c0_47, %c2176], %44 {strides = array<i32>} : memref<16x2432xf32, #tpu.memory_space<vmem>>, vector<16x128xf32>,
    %c25 = arith.constant 25 : index
    %c0_48 = arith.constant 0 : index
    %46 = vector.load %arg6[%c25, %c0_48] : memref<48x128xf32, #tpu.memory_space<vmem>>, vector<16x128xf32>
    %c0_49 = arith.constant 0 : index
    %c2304 = arith.constant 2304 : index
    %47 = vector.load %arg7[%c0_49, %c2304] : memref<16x2432xf32, #tpu.memory_space<vmem>>, vector<16x128xf32>
    tpu.vector_store %arg7[%c0_49, %c2304], %46 {strides = array<i32>} : memref<16x2432xf32, #tpu.memory_space<vmem>>, vector<16x128xf32>,
    %c0_50 = arith.constant 0 : index
    %c0_51 = arith.constant 0 : index
    %48 = vector.load %arg7[%c0_50, %c0_51] : memref<16x2432xf32, #tpu.memory_space<vmem>>, vector<16x2432xf32>
    %c0_52 = arith.constant 0 : index
    %c0_53 = arith.constant 0 : index
    %49 = vector.load %arg4[%c0_52, %c0_53] : memref<2432x128xf32, #tpu.memory_space<vmem>>, vector<2432x128xf32>
    %cst_54 = arith.constant dense<0.000000e+00> : vector<16x128xf32>
    %50 = tpu.matmul %48, %49, %cst_54 {dimension_numbers = #tpu.dot_dimension_numbers<[1], [0], [0], [1], [0, 0, 1, 1], [], []>} : vector<16x2432xf32>, vector<2432x128xf32>, vector<16x128xf32> -> vector<16x128xf32>
    %51 = arith.addf %50, %5 : vector<16x128xf32>
    %c0_55 = arith.constant 0 : index
    %c0_56 = arith.constant 0 : index
    %52 = vector.load %arg5[%c0_55, %c0_56] : memref<16x128xf32, #tpu.memory_space<vmem>>, vector<16x128xf32>
    tpu.vector_store %arg5[%c0_55, %c0_56], %51 {strides = array<i32>} : memref<16x128xf32, #tpu.memory_space<vmem>>, vector<16x128xf32>,
    return
  }
  func.func @transform_0(%arg0: i32) -> (i32, i32) {
    %c0_i32 = arith.constant 0 : i32
    %c0_i32_0 = arith.constant 0 : i32
    return %arg0, %c0_i32 : i32, i32
  }
  func.func @transform_1(%arg0: i32) -> (i32, i32) {
    %c0_i32 = arith.constant 0 : i32
    %c0_i32_0 = arith.constant 0 : i32
    %c0_i32_1 = arith.constant 0 : i32
    return %c0_i32, %c0_i32_0 : i32, i32
  }
  func.func @transform_2(%arg0: i32) -> (i32, i32) {
    %c0_i32 = arith.constant 0 : i32
    %c0_i32_0 = arith.constant 0 : i32
    %c0_i32_1 = arith.constant 0 : i32
    return %c0_i32, %c0_i32_0 : i32, i32
  }
  func.func @transform_3(%arg0: i32) -> (i32, i32) {
    %c0_i32 = arith.constant 0 : i32
    %c0_i32_0 = arith.constant 0 : i32
    %c0_i32_1 = arith.constant 0 : i32
    return %c0_i32, %c0_i32_0 : i32, i32
  }
  func.func @transform_4(%arg0: i32) -> (i32, i32) {
    %c0_i32 = arith.constant 0 : i32
    %c0_i32_0 = arith.constant 0 : i32
    return %arg0, %c0_i32 : i32, i32
  }
}

</mosaic_0001>

<bundles_post_ra>
// kernel: rfp3_forward.1
= control target key start
LH: loop header
LB: loop body
LE: loop exit
PB: predicated region body
PF: predicated region fallthrough
CT: control target
= control target key end

     0   :  { %9 = vsyncpa [#allocation5], 0  ;;  %s2371_s0 = inlined_call_operand.vmem [shape: f32[32,128], index: 0, kind: input, shape index: {}]   ;;  %s2372_s1 = inlined_call_operand.hbm [shape: f32[128,128], index: 1, kind: input, shape index: {}]   ;;  %s2373_s2 = inlined_call_operand.hbm [shape: f32[1,128], index: 2, kind: input, shape index: {}]   ;;  %s2374_s3 = inlined_call_operand.hbm [shape: f32[2432,128], index: 3, kind: input, shape index: {}]   ;;  %s2375_s4 = inlined_call_operand.vmem [shape: f32[32,128], index: 4, kind: output, shape index: {}]  }
   0x1   :  { %10 = vsyncpa [#allocation7], 0  ;;  %s2242_s15 = smov 0  }
   0x2 LB: > { %s2211_s16 = smov [#allocation6]   ;;  %s1606_s18 = sadd.s32 4294967295, %s2209_s15   ;;  %s2209_s15 = sphi %s2242_s15, %s16_s15  }
   0x3   : > { %s162_s17 = sshll.u32 %s2211_s16, 4  ;;  %p1608_p0 = scmp.ge.s32.totalorder %s2209_s15, 1  ;;  %s163_s17 = int_to_ptr.vmem [resolvable:$true] %s162_s17 }
   0x4   : > { %p136_p1 = scmp.lt.s32.totalorder %s2209_s15, 3  ;;  %p2252_p2 = scmp.eq.s32.totalorder %s1606_s18, 0 }
   0x5   : > { %s2212_s21 = smov [#allocation4]   ;;  %s2213_s24 = smov [#allocation8]  }
   0x6   : > { %s2379_s19 = scalar_select %p2252_p2, 1, 0 }
   0x7   : > { %p2256_p3 = pnand %p1608_p0, %p136_p1  ;;  %s148_s22 = sshll.u32 %s2212_s21, 4  ;;  %s149_s22 = int_to_ptr.vmem [resolvable:$true] %s148_s22 }
   0x8   : > { %s172_s25 = sshll.u32 %s2213_s24, 4  ;;  %s2128_s26 = scalar_lea.vmem %s163_s17, 16  ;;  %s2268_s25 = int_to_ptr.vmem [resolvable:$true] %s172_s25 }
   0x9   : > { %s2380_s20 = scalar_select %p2256_p3, 1, 0 }
   0xa   : > { %p2084_p4 = pneg %p2256_p3  ;;  %p2129_p7 = scmp.ne.s32.totalorder %s163_s17, %s2128_s26 }
   0xb   : > { %s2135_s27 = scalar_lea.vmem %s163_s17, 32  ;;  %p2136_p10 = scmp.lt.s32.totalorder %s163_s17, %s163_s17 }
   0xc   : > { %p2264_p5 = pnand %p2252_p2, %p2084_p4  ;;  %p2137_p11 = scmp.lt.s32.totalorder %s2135_s27, %s2128_s26 }
   0xe   : > { %p2119_p6 = pneg %p2264_p5  ;;  %p2138_p12 = por %p2137_p11, %p2136_p10 }
  0x10   : > { %p2131_p8 = pnand %p2129_p7, %p2119_p6 }
  0x12   : > { %p2132_p9 = pneg %p2131_p8 }
  0x14   : > { %p2139_p13 = pnand %p2138_p12, %p2132_p9 }
  0x16   : > { %2142 = shalt.err (!%p2139_p13)
}
  0x17   : > { %2090 = dma.hbm_to_vmem [thread:$0]  (!%p2264_p5), %s2373_s2, 16, %s163_s17, [#allocation7]  }
  0x18   : > { %s2154_s30 = scalar_lea.vmem %s149_s22, 2048  ;;  %p2162_p7 = scmp.lt.s32.totalorder %s149_s22, %s149_s22 }
  0x19   : > { %p2155_p0 = scmp.ne.s32.totalorder %s149_s22, %s2154_s30  ;;  %p2163_p8 = scmp.lt.s32.totalorder %s2154_s30, %s2154_s30 }
  0x1b   : > { %p2157_p1 = pnand %p2155_p0, %p2119_p6  ;;  %p2164_p2 = por %p2163_p8, %p2162_p7 }
  0x1d   : > { %p2158_p4 = pneg %p2157_p1 }
  0x1f   : > { %p2165_p3 = pnand %p2164_p2, %p2158_p4 }
  0x21   : > { %2168 = shalt.err (!%p2165_p3)
}
  0x22   : > { %s2214_s5 = smov 128   ;;  %s2215_s6 = smov 8  }
  0x23   : > { %2087 = dma.hbm_to_vmem [thread:$0]  (!%p2264_p5), %s2372_s1, 2048, %s149_s22, [#allocation5], %s2214_s5, %s2214_s5, %s2215_s6  }
  0x24   : > { %s2180_s9 = scalar_lea.vmem %s2268_s25, 38912  ;;  %p2188_p2 = scmp.lt.s32.totalorder %s2268_s25, %s2268_s25 }
  0x25   : > { %p2181_p9 = scmp.ne.s32.totalorder %s2268_s25, %s2180_s9  ;;  %p2189_p3 = scmp.lt.s32.totalorder %s2180_s9, %s2180_s9 }
  0x27   : > { %p2183_p10 = pnand %p2181_p9, %p2119_p6  ;;  %p2190_p12 = por %p2189_p3, %p2188_p2 }
  0x29   : > { %p2184_p11 = pneg %p2183_p10 }
  0x2b   : > { %p2191_p13 = pnand %p2190_p12, %p2184_p11 }
  0x2d   : > { %2194 = shalt.err (!%p2191_p13)
}
  0x2e   : > { %2093 = dma.hbm_to_vmem [thread:$0]  (!%p2264_p5), %s2374_s3, 38912, %s2268_s25, [#allocation7], %s2214_s5, %s2214_s5, %s2215_s6  }
  0x2f   : > { %p2382_p0 = scmp.ne.s32.totalorder %s2380_s20, 0 }
  0x30   : > { %p2383_p1 = scmp.ne.s32.totalorder (!%p2382_p0), %s2379_s19, 0 }
  0x31   : > { %197 = sbr.rel (%p2382_p0) target bundleno = 636 (0x27c), region = 36 }
  0x36   : > { %2200 = dma.done.wait (%p2383_p1), [#allocation5], 2048  }
  0x37   : > { %2202 = vsyncadd (%p2383_p1), [#allocation5], 4294965248 }
  0x38   : > { %2204 = dma.done.wait (%p2383_p1), [#allocation7], 38928  }
  0x39   : > { %2206 = vsyncadd (%p2383_p1), [#allocation7], 4294928368  ;;  %v2216_v0 = vmov 0.0   ;;  %v260_v1 = vld [vmem:[#allocation4 + $0x78] sm:$0xff]  ;;  %v259_v4 = vld [vmem:[#allocation4 + $0x70] sm:$0xff]  ;;  %s1617_s12 = sshll.u32 %s1606_s18, 1 }
  0x3a   : > { %344 = vst [vmem:[#allocation2 + $0x8] sm:$0xff] %v2216_v0  ;;  %831 = vmatprep.mubr.f32.mxu1 %v2216_v0  ;;  %343 = vst [vmem:[#allocation2] sm:$0xff] %v2216_v0  ;;  %v494_v2 = vld [vmem:[#allocation8 + $0xf8] sm:$0xff]  ;;  %2002 = vmatprep.subr.mxu0 %v260_v1  ;;  %v493_v5 = vld [vmem:[#allocation8 + $0xf0] sm:$0xff]  ;;  %p232_p5 = scmp.lt.s32.totalorder %s1617_s12, 3 }
  0x3b   : > { %345 = vst [vmem:[#allocation2 + $0x20] sm:$0xff] %v2216_v0  ;;  %346 = vst [vmem:[#allocation2 + $0x28] sm:$0xff] %v2216_v0  ;;  %v478_v3 = vld [vmem:[#allocation8 + $0x78] sm:$0xff]  ;;  %1642 = vmatprep.subr.mxu1 %v494_v2  ;;  %v477_v6 = vld [vmem:[#allocation8 + $0x70] sm:$0xff]  ;;  %2003 = vmatpush3.msra.mxu0 %v260_v1 }
  0x3c   : > { %1643 = vmatpush3.msra.mxu1 %v478_v3  ;;  %v258_v7 = vld [vmem:[#allocation4 + $0x68] sm:$0xff]  ;;  %2004 = vmatprep.subr.mxu0 %v259_v4  ;;  %v257_v10 = vld [vmem:[#allocation4 + $0x60] sm:$0xff]  ;;  %v256_v13 = vld [vmem:[#allocation4 + $0x58] sm:$0xff]  ;;  %s2385_s12 = smov (!%p232_p5, %s1617_s12), 3 }
  0x3d   : > { %v492_v8 = vld [vmem:[#allocation8 + $0xe8] sm:$0xff]  ;;  %1644 = vmatprep.subr.mxu1 %v493_v5  ;;  %2005 = vmatpush3.msra.mxu0 %v259_v4  ;;  %v491_v11 = vld [vmem:[#allocation8 + $0xe0] sm:$0xff]  ;;  %v490_v14 = vld [vmem:[#allocation8 + $0xd8] sm:$0xff]  ;;  %s1618_s13 = sshll.u32 %s2385_s12, 3 }
  0x3e   : > { %v476_v9 = vld [vmem:[#allocation8 + $0x68] sm:$0xff]  ;;  %1645 = vmatpush3.msra.mxu1 %v477_v6  ;;  %2006 = vmatprep.subr.mxu0 %v258_v7  ;;  %v475_v12 = vld [vmem:[#allocation8 + $0x60] sm:$0xff]  ;;  %v474_v15 = vld [vmem:[#allocation8 + $0x58] sm:$0xff]  ;;  %s235_s17 = scalar_lea.vmem %s2371_s0, %s1618_s13  ;;  %s241_s20 = scalar_lea.vmem %s2375_s4, %s1618_s13 }
  0x3f   : > { %1646 = vmatprep.subr.mxu1 %v492_v8  ;;  %2007 = vmatpush3.msra.mxu0 %v258_v7  ;;  %v255_v16 = vld [vmem:[#allocation4 + $0x50] sm:$0xff]  ;;  %v254_v19 = vld [vmem:[#allocation4 + $0x48] sm:$0xff]  ;;  %v253_v22 = vld [vmem:[#allocation4 + $0x40] sm:$0xff] }
  0x40   : > { %1647 = vmatpush3.msra.mxu1 %v476_v9  ;;  %2008 = vmatprep.subr.mxu0 %v257_v10  ;;  %v489_v17 = vld [vmem:[#allocation8 + $0xd0] sm:$0xff]  ;;  %v488_v20 = vld [vmem:[#allocation8 + $0xc8] sm:$0xff]  ;;  %v487_v23 = vld [vmem:[#allocation8 + $0xc0] sm:$0xff] }
  0x41   : > { %1648 = vmatprep.subr.mxu1 %v491_v11  ;;  %2009 = vmatpush3.msra.mxu0 %v257_v10  ;;  %v473_v18 = vld [vmem:[#allocation8 + $0x50] sm:$0xff]  ;;  %v472_v21 = vld [vmem:[#allocation8 + $0x48] sm:$0xff]  ;;  %v471_v24 = vld [vmem:[#allocation8 + $0x40] sm:$0xff] }
  0x42   : > { %1649 = vmatpush3.msra.mxu1 %v475_v12  ;;  %2010 = vmatprep.subr.mxu0 %v256_v13  ;;  %v252_v25 = vld [vmem:[#allocation4 + $0x38] sm:$0xff]  ;;  %v251_v28 = vld [vmem:[#allocation4 + $0x30] sm:$0xff]  ;;  %v250_v31 = vld [vmem:[#allocation4 + $0x28] sm:$0xff] }
  0x43   : > { %1650 = vmatprep.subr.mxu1 %v490_v14  ;;  %2011 = vmatpush3.msra.mxu0 %v256_v13  ;;  %v486_v26 = vld [vmem:[#allocation8 + $0xb8] sm:$0xff]  ;;  %v485_v29 = vld [vmem:[#allocation8 + $0xb0] sm:$0xff]  ;;  %v484_v32 = vld [vmem:[#allocation8 + $0xa8] sm:$0xff] }
  0x44   : > { %1651 = vmatpush3.msra.mxu1 %v474_v15  ;;  %2012 = vmatprep.subr.mxu0 %v255_v16  ;;  %v470_v27 = vld [vmem:[#allocation8 + $0x38] sm:$0xff]  ;;  %v469_v30 = vld [vmem:[#allocation8 + $0x30] sm:$0xff]  ;;  %v468_v33 = vld [vmem:[#allocation8 + $0x28] sm:$0xff] }
  0x45   : > { %1652 = vmatprep.subr.mxu1 %v489_v17  ;;  %2013 = vmatpush3.msra.mxu0 %v255_v16  ;;  %v249_v34 = vld [vmem:[#allocation4 + $0x20] sm:$0xff]  ;;  %v248_v37 = vld [vmem:[#allocation4 + $0x18] sm:$0xff]  ;;  %v247_v40 = vld [vmem:[#allocation4 + $0x10] sm:$0xff] }
  0x46   : > { %1653 = vmatpush3.msra.mxu1 %v473_v18  ;;  %2014 = vmatprep.subr.mxu0 %v254_v19  ;;  %v483_v35 = vld [vmem:[#allocation8 + $0xa0] sm:$0xff]  ;;  %v482_v38 = vld [vmem:[#allocation8 + $0x98] sm:$0xff]  ;;  %v481_v41 = vld [vmem:[#allocation8 + $0x90] sm:$0xff] }
  0x47   : > { %1654 = vmatprep.subr.mxu1 %v488_v20  ;;  %2015 = vmatpush3.msra.mxu0 %v254_v19  ;;  %v467_v36 = vld [vmem:[#allocation8 + $0x20] sm:$0xff]  ;;  %v466_v39 = vld [vmem:[#allocation8 + $0x18] sm:$0xff]  ;;  %v465_v42 = vld [vmem:[#allocation8 + $0x10] sm:$0xff] }
  0x48   : > { %1655 = vmatpush3.msra.mxu1 %v472_v21  ;;  %2016 = vmatprep.subr.mxu0 %v253_v22  ;;  %v246_v43 = vld [vmem:[#allocation4 + $0x8] sm:$0xff]  ;;  %v245_v46 = vld [vmem:[#allocation4] sm:$0xff]  ;;  %v243_v48 = vld [vmem:[%s235_s17] sm:$0xff] }
  0x49   : > { %1656 = vmatprep.subr.mxu1 %v487_v23  ;;  %2017 = vmatpush3.msra.mxu0 %v253_v22  ;;  %v480_v44 = vld [vmem:[#allocation8 + $0x88] sm:$0xff]  ;;  %v479_v47 = vld [vmem:[#allocation8 + $0x80] sm:$0xff]  ;;  %v244_v50 = vld [vmem:[%s235_s17 + $0x8] sm:$0xff] }
  0x4a   : > { %1657 = vmatpush3.msra.mxu1 %v471_v24  ;;  %2018 = vmatprep.subr.mxu0 %v252_v25  ;;  %v464_v45 = vld [vmem:[#allocation8 + $0x8] sm:$0xff]  ;;  %v463_v49 = vld [vmem:[#allocation8] sm:$0xff]  ;;  %v349_v51 = vld [vmem:[#allocation2 + $0x7] sm:$0xff] }
  0x4b   : > { %1658 = vmatprep.subr.mxu1 %v486_v26  ;;  %2019 = vmatpush3.msra.mxu0 %v252_v25  ;;  %v526_v52 = vld [vmem:[#allocation8 + $0x1f8] sm:$0xff]  ;;  %v525_v55 = vld [vmem:[#allocation8 + $0x1f0] sm:$0xff]  ;;  %v524_v59 = vld [vmem:[#allocation8 + $0x1e8] sm:$0xff] }
  0x4c   : > { %1659 = vmatpush3.msra.mxu1 %v470_v27  ;;  %2020 = vmatprep.subr.mxu0 %v251_v28  ;;  %v510_v53 = vld [vmem:[#allocation8 + $0x178] sm:$0xff]  ;;  %v509_v57 = vld [vmem:[#allocation8 + $0x170] sm:$0xff]  ;;  %v508_v61 = vld [vmem:[#allocation8 + $0x168] sm:$0xff] }
  0x4d   : > { %1660 = vmatprep.subr.mxu1 %v485_v29  ;;  %2021 = vmatpush3.msra.mxu0 %v251_v28  ;;  %v558_v54 = vld [vmem:[#allocation8 + $0x2f8] sm:$0xff]  ;;  %v557_v58 = vld [vmem:[#allocation8 + $0x2f0] sm:$0xff]  ;;  %v556_v62 = vld [vmem:[#allocation8 + $0x2e8] sm:$0xff] }
  0x4e   : > { %1661 = vmatpush3.msra.mxu1 %v469_v30  ;;  %2022 = vmatprep.subr.mxu0 %v250_v31  ;;  %v542_v56 = vld [vmem:[#allocation8 + $0x278] sm:$0xff]  ;;  %v541_v60 = vld [vmem:[#allocation8 + $0x270] sm:$0xff]  ;;  %v523_v63 = vld [vmem:[#allocation8 + $0x1e0] sm:$0xff] }
  0x4f   : > { %1662 = vmatprep.subr.mxu1 %v484_v32  ;;  %2023 = vmatpush3.msra.mxu0 %v250_v31  ;;  %v540_v0 = vld [vmem:[#allocation8 + $0x268] sm:$0xff]  ;;  %v507_v1 = vld [vmem:[#allocation8 + $0x160] sm:$0xff]  ;;  %v522_v3 = vld [vmem:[#allocation8 + $0x1d8] sm:$0xff] }
  0x50   : > { %1663 = vmatpush3.msra.mxu1 %v468_v33  ;;  %2024 = vmatprep.subr.mxu0 %v249_v34  ;;  %v555_v2 = vld [vmem:[#allocation8 + $0x2e0] sm:$0xff]  ;;  %v506_v5 = vld [vmem:[#allocation8 + $0x158] sm:$0xff]  ;;  %v521_v7 = vld [vmem:[#allocation8 + $0x1d0] sm:$0xff] }
  0x51   : > { %1664 = vmatprep.subr.mxu1 %v483_v35  ;;  %2025 = vmatpush3.msra.mxu0 %v249_v34  ;;  %v539_v4 = vld [vmem:[#allocation8 + $0x260] sm:$0xff]  ;;  %v554_v6 = vld [vmem:[#allocation8 + $0x2d8] sm:$0xff]  ;;  %v505_v9 = vld [vmem:[#allocation8 + $0x150] sm:$0xff] }
  0x52   : > { %1665 = vmatpush3.msra.mxu1 %v467_v36  ;;  %2026 = vmatprep.subr.mxu0 %v248_v37  ;;  %v538_v8 = vld [vmem:[#allocation8 + $0x258] sm:$0xff]  ;;  %v553_v10 = vld [vmem:[#allocation8 + $0x2d0] sm:$0xff]  ;;  %v520_v11 = vld [vmem:[#allocation8 + $0x1c8] sm:$0xff] }
  0x53   : > { %1666 = vmatprep.subr.mxu1 %v482_v38  ;;  %2027 = vmatpush3.msra.mxu0 %v248_v37  ;;  %v537_v12 = vld [vmem:[#allocation8 + $0x250] sm:$0xff]  ;;  %v504_v13 = vld [vmem:[#allocation8 + $0x148] sm:$0xff]  ;;  %v519_v15 = vld [vmem:[#allocation8 + $0x1c0] sm:$0xff] }
  0x54   : > { %1667 = vmatpush3.msra.mxu1 %v466_v39  ;;  %2028 = vmatprep.subr.mxu0 %v247_v40  ;;  %v552_v14 = vld [vmem:[#allocation8 + $0x2c8] sm:$0xff]  ;;  %v503_v17 = vld [vmem:[#allocation8 + $0x140] sm:$0xff]  ;;  %v518_v19 = vld [vmem:[#allocation8 + $0x1b8] sm:$0xff] }
  0x55   : > { %1668 = vmatprep.subr.mxu1 %v481_v41  ;;  %2029 = vmatpush3.msra.mxu0 %v247_v40  ;;  %v536_v16 = vld [vmem:[#allocation8 + $0x248] sm:$0xff]  ;;  %v551_v18 = vld [vmem:[#allocation8 + $0x2c0] sm:$0xff]  ;;  %v502_v20 = vld [vmem:[#allocation8 + $0x138] sm:$0xff] }
  0x56   : > { %1669 = vmatpush3.msra.mxu1 %v465_v42  ;;  %2030 = vmatprep.subr.mxu0 %v246_v43  ;;  %v517_v21 = vld [vmem:[#allocation8 + $0x1b0] sm:$0xff]  ;;  %v535_v22 = vld [vmem:[#allocation8 + $0x240] sm:$0xff]  ;;  %v550_v24 = vld [vmem:[#allocation8 + $0x2b8] sm:$0xff] }
  0x57   : > { %1670 = vmatprep.subr.mxu1 %v480_v44  ;;  %2031 = vmatpush3.msra.mxu0 %v246_v43  ;;  %v501_v23 = vld [vmem:[#allocation8 + $0x130] sm:$0xff]  ;;  %v516_v25 = vld [vmem:[#allocation8 + $0x1a8] sm:$0xff]  ;;  %v534_v26 = vld [vmem:[#allocation8 + $0x238] sm:$0xff] }
  0x58   : > { %1671 = vmatpush3.msra.mxu1 %v464_v45  ;;  %2032 = vmatprep.subr.mxu0 %v245_v46  ;;  %v500_v27 = vld [vmem:[#allocation8 + $0x128] sm:$0xff]  ;;  %v549_v28 = vld [vmem:[#allocation8 + $0x2b0] sm:$0xff]  ;;  %v515_v29 = vld [vmem:[#allocation8 + $0x1a0] sm:$0xff] }
  0x59   : > { %1672 = vmatprep.subr.mxu1 %v479_v47  ;;  %2033 = vmatpush3.msra.mxu0 %v245_v46  ;;  %v533_v30 = vld [vmem:[#allocation8 + $0x230] sm:$0xff]  ;;  %v499_v31 = vld [vmem:[#allocation8 + $0x120] sm:$0xff]  ;;  %v548_v32 = vld [vmem:[#allocation8 + $0x2a8] sm:$0xff] }
  0x5a   : > { %2034 = vmatprep.mubr.f32.mxu0 %v243_v48  ;;  %1673 = vmatpush3.msra.mxu1 %v463_v49  ;;  %v514_v33 = vld [vmem:[#allocation8 + $0x198] sm:$0xff]  ;;  %v532_v34 = vld [vmem:[#allocation8 + $0x228] sm:$0xff]  ;;  %v513_v36 = vld [vmem:[#allocation8 + $0x190] sm:$0xff] }
  0x5b   : > { %2035 = vmatmul.mubr.f32.vlgmr.msra.gmra.mxu0 %v244_v50  ;;  %832 = vmatmul.mubr.f32.vlgmr.msra.gmra.mxu1 %v349_v51  ;;  %v498_v35 = vld [vmem:[#allocation8 + $0x118] sm:$0xff]  ;;  %v547_v37 = vld [vmem:[#allocation8 + $0x2a0] sm:$0xff]  ;;  %v497_v38 = vld [vmem:[#allocation8 + $0x110] sm:$0xff] }
  0x5c   : > { %1680 = vmatprep.subr.mxu0 %v526_v52  ;;  %1718 = vmatprep.subr.mxu1 %v558_v54  ;;  %v531_v39 = vld [vmem:[#allocation8 + $0x220] sm:$0xff]  ;;  %v512_v40 = vld [vmem:[#allocation8 + $0x188] sm:$0xff]  ;;  %v546_v41 = vld [vmem:[#allocation8 + $0x298] sm:$0xff] }
  0x5d   : > { %1681 = vmatpush3.msra.mxu0 %v510_v53  ;;  %1719 = vmatpush3.msra.mxu1 %v542_v56  ;;  %v496_v42 = vld [vmem:[#allocation8 + $0x108] sm:$0xff]  ;;  %v530_v43 = vld [vmem:[#allocation8 + $0x218] sm:$0xff]  ;;  %v511_v44 = vld [vmem:[#allocation8 + $0x180] sm:$0xff] }
  0x5e   : > { %1682 = vmatprep.subr.mxu0 %v525_v55  ;;  %1720 = vmatprep.subr.mxu1 %v557_v58  ;;  %v545_v45 = vld [vmem:[#allocation8 + $0x290] sm:$0xff]  ;;  %v495_v46 = vld [vmem:[#allocation8 + $0x100] sm:$0xff]  ;;  %v544_v48 = vld [vmem:[#allocation8 + $0x288] sm:$0xff] }
  0x5f   : > { %1683 = vmatpush3.msra.mxu0 %v509_v57  ;;  %1721 = vmatpush3.msra.mxu1 %v541_v60  ;;  %v529_v47 = vld [vmem:[#allocation8 + $0x210] sm:$0xff]  ;;  %v590_v49 = vld [vmem:[#allocation8 + $0x3f8] sm:$0xff]  ;;  %v528_v50 = vld [vmem:[#allocation8 + $0x208] sm:$0xff] }
  0x60   : > { %1684 = vmatprep.subr.mxu0 %v524_v59  ;;  %1722 = vmatprep.subr.mxu1 %v556_v62  ;;  %v543_v51 = vld [vmem:[#allocation8 + $0x280] sm:$0xff]  ;;  %v622_v53 = vld [vmem:[#allocation8 + $0x4f8] sm:$0xff] }
  0x61   : > { %1685 = vmatpush3.msra.mxu0 %v508_v61  ;;  %1723 = vmatpush3.msra.mxu1 %v540_v0  ;;  %v527_v52 = vld [vmem:[#allocation8 + $0x200] sm:$0xff]  ;;  %v1621_v54 = vld [vmem:[#allocation6] ss:$0 sm:$0xff]  ;;  %v589_v0 = vld [vmem:[#allocation8 + $0x3f0] sm:$0xff] }
  0x62   : > { %1686 = vmatprep.subr.mxu0 %v523_v63  ;;  %1724 = vmatprep.subr.mxu1 %v555_v2  ;;  %v574_v59 = vld [vmem:[#allocation8 + $0x378] sm:$0xff]  ;;  %v573_v2 = vld [vmem:[#allocation8 + $0x370] sm:$0xff] }
  0x63   : > { %1687 = vmatpush3.msra.mxu0 %v507_v1  ;;  %1725 = vmatpush3.msra.mxu1 %v539_v4 }
  0x64   : > { %1688 = vmatprep.subr.mxu0 %v522_v3  ;;  %1726 = vmatprep.subr.mxu1 %v554_v6  ;;  %v588_v3 = vld [vmem:[#allocation8 + $0x3e8] sm:$0xff]  ;;  %v606_v6 = vld [vmem:[#allocation8 + $0x478] sm:$0xff] }
  0x65   : > { %1689 = vmatpush3.msra.mxu0 %v506_v5  ;;  %1727 = vmatpush3.msra.mxu1 %v538_v8  ;;  %v572_v5 = vld [vmem:[#allocation8 + $0x368] sm:$0xff]  ;;  %v587_v8 = vld [vmem:[#allocation8 + $0x3e0] sm:$0xff] }
  0x66   : > { %1690 = vmatprep.subr.mxu0 %v521_v7  ;;  %1728 = vmatprep.subr.mxu1 %v553_v10 }
  0x67   : > { %1691 = vmatpush3.msra.mxu0 %v505_v9  ;;  %1729 = vmatpush3.msra.mxu1 %v537_v12  ;;  %v621_v9 = vld [vmem:[#allocation8 + $0x4f0] sm:$0xff] }
  0x68   : > { %1692 = vmatprep.subr.mxu0 %v520_v11  ;;  %1730 = vmatprep.subr.mxu1 %v552_v14  ;;  %v571_v11 = vld [vmem:[#allocation8 + $0x360] sm:$0xff]  ;;  %v605_v12 = vld [vmem:[#allocation8 + $0x470] sm:$0xff]  ;;  %v586_v14 = vld [vmem:[#allocation8 + $0x3d8] sm:$0xff] }
  0x69   : > { %1693 = vmatpush3.msra.mxu0 %v504_v13  ;;  %1731 = vmatpush3.msra.mxu1 %v536_v16  ;;  %v570_v16 = vld [vmem:[#allocation8 + $0x358] sm:$0xff] }
  0x6a   : > { %1694 = vmatprep.subr.mxu0 %v519_v15  ;;  %1732 = vmatprep.subr.mxu1 %v551_v18  ;;  %v620_v15 = vld [vmem:[#allocation8 + $0x4e8] sm:$0xff]  ;;  %v585_v18 = vld [vmem:[#allocation8 + $0x3d0] sm:$0xff] }
  0x6b   : > { %1695 = vmatpush3.msra.mxu0 %v503_v17  ;;  %1733 = vmatpush3.msra.mxu1 %v535_v22  ;;  %v604_v17 = vld [vmem:[#allocation8 + $0x468] sm:$0xff]  ;;  %v603_v22 = vld [vmem:[#allocation8 + $0x460] sm:$0xff] }
  0x6c   : > { %1696 = vmatprep.subr.mxu0 %v518_v19  ;;  %1734 = vmatprep.subr.mxu1 %v550_v24  ;;  %v618_v24 = vld [vmem:[#allocation8 + $0x4d8] sm:$0xff] }
  0x6d   : > { %1697 = vmatpush3.msra.mxu0 %v502_v20  ;;  %1735 = vmatpush3.msra.mxu1 %v534_v26  ;;  %v619_v20 = vld [vmem:[#allocation8 + $0x4e0] sm:$0xff]  ;;  %v602_v26 = vld [vmem:[#allocation8 + $0x458] sm:$0xff] }
  0x6e   : > { %1698 = vmatprep.subr.mxu0 %v517_v21  ;;  %1736 = vmatprep.subr.mxu1 %v549_v28  ;;  %v569_v21 = vld [vmem:[#allocation8 + $0x350] sm:$0xff] }
  0x6f   : > { %1699 = vmatpush3.msra.mxu0 %v501_v23  ;;  %1737 = vmatpush3.msra.mxu1 %v533_v30  ;;  %v584_v23 = vld [vmem:[#allocation8 + $0x3c8] sm:$0xff]  ;;  %v617_v28 = vld [vmem:[#allocation8 + $0x4d0] sm:$0xff] }
  0x70   : > { %1700 = vmatprep.subr.mxu0 %v516_v25  ;;  %1738 = vmatprep.subr.mxu1 %v548_v32  ;;  %v568_v25 = vld [vmem:[#allocation8 + $0x348] sm:$0xff]  ;;  %v601_v30 = vld [vmem:[#allocation8 + $0x450] sm:$0xff] }
  0x71   : > { %1701 = vmatpush3.msra.mxu0 %v500_v27  ;;  %1739 = vmatpush3.msra.mxu1 %v532_v34  ;;  %v583_v27 = vld [vmem:[#allocation8 + $0x3c0] sm:$0xff]  ;;  %v616_v32 = vld [vmem:[#allocation8 + $0x4c8] sm:$0xff] }
  0x72   : > { %1702 = vmatprep.subr.mxu0 %v515_v29  ;;  %1740 = vmatprep.subr.mxu1 %v547_v37  ;;  %v567_v29 = vld [vmem:[#allocation8 + $0x340] sm:$0xff]  ;;  %v600_v34 = vld [vmem:[#allocation8 + $0x448] sm:$0xff]  ;;  %v565_v37 = vld [vmem:[#allocation8 + $0x330] sm:$0xff] }
  0x73   : > { %1703 = vmatpush3.msra.mxu0 %v499_v31  ;;  %1741 = vmatpush3.msra.mxu1 %v531_v39  ;;  %v582_v31 = vld [vmem:[#allocation8 + $0x3b8] sm:$0xff]  ;;  %v580_v39 = vld [vmem:[#allocation8 + $0x3a8] sm:$0xff] }
  0x74   : > { %1704 = vmatprep.subr.mxu0 %v514_v33  ;;  %1742 = vmatprep.subr.mxu1 %v546_v41  ;;  %v566_v33 = vld [vmem:[#allocation8 + $0x338] sm:$0xff]  ;;  %v564_v41 = vld [vmem:[#allocation8 + $0x328] sm:$0xff] }
  0x75   : > { %1705 = vmatpush3.msra.mxu0 %v498_v35  ;;  %1743 = vmatpush3.msra.mxu1 %v530_v43  ;;  %v581_v35 = vld [vmem:[#allocation8 + $0x3b0] sm:$0xff]  ;;  %v579_v43 = vld [vmem:[#allocation8 + $0x3a0] sm:$0xff] }
  0x76   : > { %1706 = vmatprep.subr.mxu0 %v513_v36  ;;  %1744 = vmatprep.subr.mxu1 %v545_v45  ;;  %v615_v36 = vld [vmem:[#allocation8 + $0x4c0] sm:$0xff] }
  0x77   : > { %1707 = vmatpush3.msra.mxu0 %v497_v38  ;;  %1745 = vmatpush3.msra.mxu1 %v529_v47  ;;  %v599_v38 = vld [vmem:[#allocation8 + $0x440] sm:$0xff]  ;;  %v578_v47 = vld [vmem:[#allocation8 + $0x398] sm:$0xff] }
  0x78   : > { %1708 = vmatprep.subr.mxu0 %v512_v40  ;;  %1746 = vmatprep.subr.mxu1 %v544_v48  ;;  %v614_v40 = vld [vmem:[#allocation8 + $0x4b8] sm:$0xff]  ;;  %v563_v45 = vld [vmem:[#allocation8 + $0x320] sm:$0xff]  ;;  %v612_v48 = vld [vmem:[#allocation8 + $0x4a8] sm:$0xff] }
  0x79   : > { %1709 = vmatpush3.msra.mxu0 %v496_v42  ;;  %1747 = vmatpush3.msra.mxu1 %v528_v50  ;;  %v598_v42 = vld [vmem:[#allocation8 + $0x438] sm:$0xff]  ;;  %v596_v50 = vld [vmem:[#allocation8 + $0x428] sm:$0xff] }
  0x7a   : > { %1710 = vmatprep.subr.mxu0 %v511_v44  ;;  %1748 = vmatprep.subr.mxu1 %v543_v51  ;;  %v613_v44 = vld [vmem:[#allocation8 + $0x4b0] sm:$0xff] }
  0x7b   : > { %1711 = vmatpush3.msra.mxu0 %v495_v46  ;;  %1749 = vmatpush3.msra.mxu1 %v527_v52  ;;  %v597_v46 = vld [vmem:[#allocation8 + $0x430] sm:$0xff]  ;;  %v611_v52 = vld [vmem:[#allocation8 + $0x4a0] sm:$0xff] }
  0x7c   : > { %1756 = vmatprep.subr.mxu0 %v590_v49  ;;  %1794 = vmatprep.subr.mxu1 %v622_v53  ;;  %v562_v49 = vld [vmem:[#allocation8 + $0x318] sm:$0xff]  ;;  %v577_v51 = vld [vmem:[#allocation8 + $0x390] sm:$0xff] }
  0x7d   : > { %v561_v53 = vld [vmem:[#allocation8 + $0x310] sm:$0xff] }
 0x11b   : > { %v2036_v55 = vpop.f32.mrf.mxu0 }
 0x11c   : > { %v2322_v56 = vadd.f32 %v2036_v55, %v1621_v54  ;;  %v576_v55 = vld [vmem:[#allocation8 + $0x388] sm:$0xff] }
 0x11d   : > { %v334_v57 = vpop.f32.mrf.mxu0 }
 0x11e   : > { %348 = vst [vmem:[#allocation2 + $0x18] sm:$0xff] %v2322_v56  ;;  %v335_v58 = vadd.f32 %v1621_v54, %v334_v57  ;;  %v595_v54 = vld [vmem:[#allocation8 + $0x420] sm:$0xff]  ;;  %v610_v57 = vld [vmem:[#allocation8 + $0x498] sm:$0xff] }
 0x120   : > { %347 = vst [vmem:[#allocation2 + $0x10] sm:$0xff] %v335_v58  ;;  %836 = vmatprep.mubr.f32.mxu1 %v335_v58 }
 0x127   : > { %v361_v60 = vld [vmem:[#allocation2 + $0xa] sm:$0xff]  ;;  %v2328_v1 = vld [vmem:[#allocation2 + $0x12] sm:$0xff] }
 0x128   : > { %v2325_v61 = vld [vmem:[#allocation2 + $0xf] sm:$0xff]  ;;  %906 = vmatprep.mubr.f32.mxu0 %v361_v60 }
 0x129   : > { %v357_v62 = vld [vmem:[#allocation2 + $0x9] sm:$0xff]  ;;  %837 = vmatmul.mubr.f32.gmra.mxu1 %v2325_v61  ;;  %v2331_v7 = vld [vmem:[#allocation2 + $0x11] sm:$0xff] }
 0x12a   : > { %v369_v63 = vld [vmem:[#allocation2 + $0xc] sm:$0xff]  ;;  %907 = vmatmul.mubr.f32.vlgmr.msra.gmra.mxu0 %v357_v62  ;;  %v2334_v10 = vld [vmem:[#allocation2 + $0x14] sm:$0xff]  ;;  %v609_v62 = vld [vmem:[#allocation8 + $0x490] sm:$0xff] }
 0x12b   : > { %981 = vmatprep.mubr.f32.mxu1 %v369_v63  ;;  %1757 = vmatpush3.msra.mxu0 %v574_v59  ;;  %v365_v4 = vld [vmem:[#allocation2 + $0xb] sm:$0xff]  ;;  %v2337_v19 = vld [vmem:[#allocation2 + $0x13] sm:$0xff] }
 0x12c   : > { %911 = vmatprep.mubr.f32.mxu0 %v2328_v1  ;;  %1758 = vmatprep.subr.mxu0 %v589_v0  ;;  %v377_v13 = vld [vmem:[#allocation2 + $0xe] sm:$0xff]  ;;  %v593_v0 = vld [vmem:[#allocation8 + $0x410] sm:$0xff] }
 0x12d   : > { %1759 = vmatpush3.msra.mxu0 %v573_v2  ;;  %982 = vmatmul.mubr.f32.vlgmr.msra.gmra.mxu1 %v365_v4  ;;  %v594_v59 = vld [vmem:[#allocation8 + $0x418] sm:$0xff]  ;;  %v575_v60 = vld [vmem:[#allocation8 + $0x380] sm:$0xff]  ;;  %v608_v2 = vld [vmem:[#allocation8 + $0x488] sm:$0xff] }
 0x12e   : > { %1760 = vmatprep.subr.mxu0 %v588_v3  ;;  %912 = vmatmul.mubr.f32.gmra.mxu0 %v2331_v7  ;;  %v559_v63 = vld [vmem:[#allocation8 + $0x300] sm:$0xff]  ;;  %v654_v3 = vld [vmem:[#allocation8 + $0x5f8] sm:$0xff] }
 0x12f   : > { %1761 = vmatpush3.msra.mxu0 %v572_v5  ;;  %1795 = vmatpush3.msra.mxu1 %v606_v6  ;;  %v373_v4 = vld [vmem:[#allocation2 + $0xd] sm:$0xff]  ;;  %v592_v5 = vld [vmem:[#allocation8 + $0x408] sm:$0xff] }
 0x130   : > { %986 = vmatprep.mubr.f32.mxu1 %v2334_v10  ;;  %1762 = vmatprep.subr.mxu0 %v587_v8  ;;  %v638_v6 = vld [vmem:[#allocation8 + $0x578] sm:$0xff]  ;;  %v2340_v8 = vld [vmem:[#allocation2 + $0x16] sm:$0xff] }
 0x131   : > { %1056 = vmatprep.mubr.f32.mxu0 %v377_v13  ;;  %1796 = vmatprep.subr.mxu1 %v621_v9  ;;  %v607_v9 = vld [vmem:[#allocation8 + $0x480] sm:$0xff]  ;;  %v637_v13 = vld [vmem:[#allocation8 + $0x570] sm:$0xff] }
 0x132   : > { %1763 = vmatpush3.msra.mxu0 %v571_v11  ;;  %1797 = vmatpush3.msra.mxu1 %v605_v12  ;;  %v653_v11 = vld [vmem:[#allocation8 + $0x5f0] sm:$0xff]  ;;  %v591_v12 = vld [vmem:[#allocation8 + $0x400] sm:$0xff] }
 0x133   : > { %1764 = vmatprep.subr.mxu0 %v586_v14  ;;  %1798 = vmatprep.subr.mxu1 %v620_v15  ;;  %v652_v14 = vld [vmem:[#allocation8 + $0x5e8] sm:$0xff]  ;;  %v686_v15 = vld [vmem:[#allocation8 + $0x6f8] sm:$0xff] }
 0x134   : > { %987 = vmatmul.mubr.f32.gmra.mxu1 %v2337_v19  ;;  %1765 = vmatpush3.msra.mxu0 %v570_v16  ;;  %v2343_v16 = vld [vmem:[#allocation2 + $0x15] sm:$0xff] }
 0x135   : > { %1799 = vmatpush3.msra.mxu1 %v604_v17  ;;  %1766 = vmatprep.subr.mxu0 %v585_v18  ;;  %v636_v17 = vld [vmem:[#allocation8 + $0x568] sm:$0xff]  ;;  %v670_v18 = vld [vmem:[#allocation8 + $0x678] sm:$0xff] }
 0x136   : > { %1800 = vmatprep.subr.mxu1 %v619_v20  ;;  %1131 = vmatprep.mubr.f32.mxu1 %v335_v58  ;;  %v560_v58 = vld [vmem:[#allocation8 + $0x308] sm:$0xff]  ;;  %v651_v20 = vld [vmem:[#allocation8 + $0x5e0] sm:$0xff] }
 0x137   : > { %1767 = vmatpush3.msra.mxu0 %v569_v21  ;;  %1801 = vmatpush3.msra.mxu1 %v603_v22  ;;  %v685_v21 = vld [vmem:[#allocation8 + $0x6f0] sm:$0xff]  ;;  %v635_v22 = vld [vmem:[#allocation8 + $0x560] sm:$0xff] }
 0x138   : > { %1768 = vmatprep.subr.mxu0 %v584_v23  ;;  %1802 = vmatprep.subr.mxu1 %v618_v24  ;;  %v669_v23 = vld [vmem:[#allocation8 + $0x670] sm:$0xff]  ;;  %v650_v24 = vld [vmem:[#allocation8 + $0x5d8] sm:$0xff] }
 0x139   : > { %1769 = vmatpush3.msra.mxu0 %v568_v25  ;;  %1803 = vmatpush3.msra.mxu1 %v602_v26  ;;  %v684_v25 = vld [vmem:[#allocation8 + $0x6e8] sm:$0xff]  ;;  %v634_v26 = vld [vmem:[#allocation8 + $0x558] sm:$0xff] }
 0x13a   : > { %1770 = vmatprep.subr.mxu0 %v583_v27  ;;  %1804 = vmatprep.subr.mxu1 %v617_v28  ;;  %v668_v27 = vld [vmem:[#allocation8 + $0x668] sm:$0xff]  ;;  %v649_v28 = vld [vmem:[#allocation8 + $0x5d0] sm:$0xff] }
 0x13b   : > { %1771 = vmatpush3.msra.mxu0 %v567_v29  ;;  %1805 = vmatpush3.msra.mxu1 %v601_v30  ;;  %v683_v29 = vld [vmem:[#allocation8 + $0x6e0] sm:$0xff]  ;;  %v633_v30 = vld [vmem:[#allocation8 + $0x550] sm:$0xff] }
 0x13c   : > { %1772 = vmatprep.subr.mxu0 %v582_v31  ;;  %1806 = vmatprep.subr.mxu1 %v616_v32  ;;  %v648_v31 = vld [vmem:[#allocation8 + $0x5c8] sm:$0xff]  ;;  %v682_v32 = vld [vmem:[#allocation8 + $0x6d8] sm:$0xff] }
 0x13d   : > { %1773 = vmatpush3.msra.mxu0 %v566_v33  ;;  %1807 = vmatpush3.msra.mxu1 %v600_v34  ;;  %v632_v33 = vld [vmem:[#allocation8 + $0x548] sm:$0xff]  ;;  %v666_v34 = vld [vmem:[#allocation8 + $0x658] sm:$0xff] }
 0x13e   : > { %1774 = vmatprep.subr.mxu0 %v581_v35  ;;  %1808 = vmatprep.subr.mxu1 %v615_v36  ;;  %v647_v35 = vld [vmem:[#allocation8 + $0x5c0] sm:$0xff]  ;;  %v681_v36 = vld [vmem:[#allocation8 + $0x6d0] sm:$0xff] }
 0x13f   : > { %1775 = vmatpush3.msra.mxu0 %v565_v37  ;;  %1809 = vmatpush3.msra.mxu1 %v599_v38  ;;  %v631_v37 = vld [vmem:[#allocation8 + $0x540] sm:$0xff]  ;;  %v665_v38 = vld [vmem:[#allocation8 + $0x650] sm:$0xff] }
 0x140   : > { %1776 = vmatprep.subr.mxu0 %v580_v39  ;;  %1810 = vmatprep.subr.mxu1 %v614_v40  ;;  %v646_v39 = vld [vmem:[#allocation8 + $0x5b8] sm:$0xff]  ;;  %v680_v40 = vld [vmem:[#allocation8 + $0x6c8] sm:$0xff] }
 0x141   : > { %1777 = vmatpush3.msra.mxu0 %v564_v41  ;;  %1811 = vmatpush3.msra.mxu1 %v598_v42  ;;  %v664_v41 = vld [vmem:[#allocation8 + $0x648] sm:$0xff]  ;;  %v645_v42 = vld [vmem:[#allocation8 + $0x5b0] sm:$0xff] }
 0x142   : > { %1778 = vmatprep.subr.mxu0 %v579_v43  ;;  %1812 = vmatprep.subr.mxu1 %v613_v44  ;;  %v679_v43 = vld [vmem:[#allocation8 + $0x6c0] sm:$0xff]  ;;  %v629_v44 = vld [vmem:[#allocation8 + $0x530] sm:$0xff] }
 0x143   : > { %1779 = vmatpush3.msra.mxu0 %v563_v45  ;;  %1813 = vmatpush3.msra.mxu1 %v597_v46  ;;  %v663_v45 = vld [vmem:[#allocation8 + $0x640] sm:$0xff]  ;;  %v644_v46 = vld [vmem:[#allocation8 + $0x5a8] sm:$0xff] }
 0x144   : > { %1780 = vmatprep.subr.mxu0 %v578_v47  ;;  %1814 = vmatprep.subr.mxu1 %v612_v48  ;;  %v678_v47 = vld [vmem:[#allocation8 + $0x6b8] sm:$0xff]  ;;  %v628_v48 = vld [vmem:[#allocation8 + $0x528] sm:$0xff] }
 0x145   : > { %1781 = vmatpush3.msra.mxu0 %v562_v49  ;;  %1815 = vmatpush3.msra.mxu1 %v596_v50  ;;  %v662_v49 = vld [vmem:[#allocation8 + $0x638] sm:$0xff]  ;;  %v643_v50 = vld [vmem:[#allocation8 + $0x5a0] sm:$0xff] }
 0x146   : > { %1782 = vmatprep.subr.mxu0 %v577_v51  ;;  %1816 = vmatprep.subr.mxu1 %v611_v52  ;;  %v677_v51 = vld [vmem:[#allocation8 + $0x6b0] sm:$0xff]  ;;  %v627_v52 = vld [vmem:[#allocation8 + $0x520] sm:$0xff] }
 0x147   : > { %1783 = vmatpush3.msra.mxu0 %v561_v53  ;;  %1817 = vmatpush3.msra.mxu1 %v595_v54  ;;  %v661_v53 = vld [vmem:[#allocation8 + $0x630] sm:$0xff]  ;;  %v642_v54 = vld [vmem:[#allocation8 + $0x598] sm:$0xff] }
 0x148   : > { %1784 = vmatprep.subr.mxu0 %v576_v55  ;;  %1818 = vmatprep.subr.mxu1 %v610_v57  ;;  %v676_v55 = vld [vmem:[#allocation8 + $0x6a8] sm:$0xff]  ;;  %v626_v57 = vld [vmem:[#allocation8 + $0x518] sm:$0xff] }
 0x149   : > { %1785 = vmatpush3.msra.mxu0 %v560_v58  ;;  %1819 = vmatpush3.msra.mxu1 %v594_v59  ;;  %v660_v58 = vld [vmem:[#allocation8 + $0x628] sm:$0xff]  ;;  %v641_v59 = vld [vmem:[#allocation8 + $0x590] sm:$0xff] }
 0x14a   : > { %1786 = vmatprep.subr.mxu0 %v575_v60  ;;  %1820 = vmatprep.subr.mxu1 %v609_v62  ;;  %v675_v60 = vld [vmem:[#allocation8 + $0x6a0] sm:$0xff]  ;;  %v625_v62 = vld [vmem:[#allocation8 + $0x510] sm:$0xff] }
 0x14b   : > { %1787 = vmatpush3.msra.mxu0 %v559_v63  ;;  %1821 = vmatpush3.msra.mxu1 %v593_v0  ;;  %v659_v63 = vld [vmem:[#allocation8 + $0x620] sm:$0xff]  ;;  %v640_v0 = vld [vmem:[#allocation8 + $0x588] sm:$0xff] }
 0x14c   : > { %1057 = vmatmul.mubr.f32.vlgmr.msra.gmra.mxu0 %v373_v4  ;;  %1822 = vmatprep.subr.mxu1 %v608_v2  ;;  %v674_v2 = vld [vmem:[#allocation8 + $0x698] sm:$0xff] }
 0x14d   : > { %1832 = vmatprep.subr.mxu0 %v654_v3  ;;  %1061 = vmatprep.mubr.f32.mxu0 %v2340_v8  ;;  %v624_v3 = vld [vmem:[#allocation8 + $0x508] sm:$0xff]  ;;  %v658_v4 = vld [vmem:[#allocation8 + $0x618] sm:$0xff] }
 0x14e   : > { %1823 = vmatpush3.msra.mxu1 %v592_v5  ;;  %1833 = vmatpush3.msra.mxu0 %v638_v6  ;;  %v639_v5 = vld [vmem:[#allocation8 + $0x580] sm:$0xff]  ;;  %v673_v6 = vld [vmem:[#allocation8 + $0x690] sm:$0xff] }
 0x14f   : > { %1824 = vmatprep.subr.mxu1 %v607_v9  ;;  %1834 = vmatprep.subr.mxu0 %v653_v11  ;;  %v623_v9 = vld [vmem:[#allocation8 + $0x500] sm:$0xff]  ;;  %v657_v11 = vld [vmem:[#allocation8 + $0x610] sm:$0xff] }
 0x150   : > { %1825 = vmatpush3.msra.mxu1 %v591_v12  ;;  %1835 = vmatpush3.msra.mxu0 %v637_v13  ;;  %v672_v12 = vld [vmem:[#allocation8 + $0x688] sm:$0xff]  ;;  %v718_v13 = vld [vmem:[#allocation8 + $0x7f8] sm:$0xff] }
 0x151   : > { %1062 = vmatmul.mubr.f32.gmra.mxu0 %v2343_v16  ;;  %1132 = vmatmul.mubr.f32.vlgmr.msra.gmra.mxu1 %v2325_v61  ;;  %v2349_v61 = vld [vmem:[#allocation2 + $0x17] sm:$0xff] }
 0x152   : > { %1836 = vmatprep.subr.mxu0 %v652_v14  ;;  %1870 = vmatprep.subr.mxu1 %v686_v15  ;;  %v656_v14 = vld [vmem:[#allocation8 + $0x608] sm:$0xff]  ;;  %v702_v15 = vld [vmem:[#allocation8 + $0x778] sm:$0xff] }
 0x153   : > { %1136 = vmatprep.mubr.f32.mxu1 %v2322_v56  ;;  %1837 = vmatpush3.msra.mxu0 %v636_v17  ;;  %v394_v17 = vld [vmem:[#allocation2 + $0x1a] sm:$0xff] }
 0x154   : > { %1206 = vmatprep.mubr.f32.mxu0 %v2328_v1  ;;  %1871 = vmatpush3.msra.mxu1 %v670_v18  ;;  %v667_v1 = vld [vmem:[#allocation8 + $0x660] sm:$0xff] }
 0x155   : > { %1838 = vmatprep.subr.mxu0 %v651_v20  ;;  %1872 = vmatprep.subr.mxu1 %v685_v21  ;;  %v671_v18 = vld [vmem:[#allocation8 + $0x680] sm:$0xff]  ;;  %v717_v20 = vld [vmem:[#allocation8 + $0x7f0] sm:$0xff] }
 0x156   : > { %1839 = vmatpush3.msra.mxu0 %v635_v22  ;;  %1873 = vmatpush3.msra.mxu1 %v669_v23  ;;  %v655_v21 = vld [vmem:[#allocation8 + $0x600] sm:$0xff]  ;;  %v701_v22 = vld [vmem:[#allocation8 + $0x770] sm:$0xff]  ;;  %v716_v23 = vld [vmem:[#allocation8 + $0x7e8] sm:$0xff] }
 0x157   : > { %1137 = vmatmul.mubr.f32.gmra.mxu1 %v2349_v61  ;;  %1840 = vmatprep.subr.mxu0 %v650_v24  ;;  %v750_v24 = vld [vmem:[#allocation8 + $0x8f8] sm:$0xff] }
 0x158   : > { %1874 = vmatprep.subr.mxu1 %v684_v25  ;;  %1841 = vmatpush3.msra.mxu0 %v634_v26  ;;  %v2354_v25 = vld [vmem:[#allocation2 + $0x19] sm:$0xff] }
 0x159   : > { %1875 = vmatpush3.msra.mxu1 %v668_v27  ;;  %1281 = vmatprep.mubr.f32.mxu1 %v2334_v10  ;;  %v630_v10 = vld [vmem:[#allocation8 + $0x538] sm:$0xff]  ;;  %v700_v26 = vld [vmem:[#allocation8 + $0x768] sm:$0xff] }
 0x15a   : > { %1842 = vmatprep.subr.mxu0 %v649_v28  ;;  %1876 = vmatprep.subr.mxu1 %v683_v29  ;;  %v402_v27 = vld [vmem:[#allocation2 + $0x1c] sm:$0xff]  ;;  %v715_v28 = vld [vmem:[#allocation8 + $0x7e0] sm:$0xff] }
 0x15b   : > { %1843 = vmatpush3.msra.mxu0 %v633_v30  ;;  %1877 = vmatpush3.msra.mxu1 %v667_v1  ;;  %v749_v29 = vld [vmem:[#allocation8 + $0x8f0] sm:$0xff]  ;;  %v699_v30 = vld [vmem:[#allocation8 + $0x760] sm:$0xff] }
 0x15c   : > { %1844 = vmatprep.subr.mxu0 %v648_v31  ;;  %1878 = vmatprep.subr.mxu1 %v682_v32  ;;  %v733_v1 = vld [vmem:[#allocation8 + $0x870] sm:$0xff]  ;;  %v714_v31 = vld [vmem:[#allocation8 + $0x7d8] sm:$0xff]  ;;  %v748_v32 = vld [vmem:[#allocation8 + $0x8e8] sm:$0xff] }
 0x15d   : > { %1845 = vmatpush3.msra.mxu0 %v632_v33  ;;  %1879 = vmatpush3.msra.mxu1 %v666_v34  ;;  %v698_v33 = vld [vmem:[#allocation8 + $0x758] sm:$0xff]  ;;  %v732_v34 = vld [vmem:[#allocation8 + $0x868] sm:$0xff] }
 0x15e   : > { %1846 = vmatprep.subr.mxu0 %v647_v35  ;;  %1880 = vmatprep.subr.mxu1 %v681_v36  ;;  %v713_v35 = vld [vmem:[#allocation8 + $0x7d0] sm:$0xff]  ;;  %v747_v36 = vld [vmem:[#allocation8 + $0x8e0] sm:$0xff] }
 0x15f   : > { %1847 = vmatpush3.msra.mxu0 %v631_v37  ;;  %1881 = vmatpush3.msra.mxu1 %v665_v38  ;;  %v697_v37 = vld [vmem:[#allocation8 + $0x750] sm:$0xff]  ;;  %v731_v38 = vld [vmem:[#allocation8 + $0x860] sm:$0xff] }
 0x160   : > { %1848 = vmatprep.subr.mxu0 %v646_v39  ;;  %1882 = vmatprep.subr.mxu1 %v680_v40  ;;  %v746_v39 = vld [vmem:[#allocation8 + $0x8d8] sm:$0xff]  ;;  %v696_v40 = vld [vmem:[#allocation8 + $0x748] sm:$0xff] }
 0x161   : > { %1849 = vmatpush3.msra.mxu0 %v630_v10  ;;  %1883 = vmatpush3.msra.mxu1 %v664_v41  ;;  %v730_v10 = vld [vmem:[#allocation8 + $0x858] sm:$0xff]  ;;  %v711_v41 = vld [vmem:[#allocation8 + $0x7c0] sm:$0xff] }
 0x162   : > { %1850 = vmatprep.subr.mxu0 %v645_v42  ;;  %1884 = vmatprep.subr.mxu1 %v679_v43  ;;  %v745_v42 = vld [vmem:[#allocation8 + $0x8d0] sm:$0xff]  ;;  %v695_v43 = vld [vmem:[#allocation8 + $0x740] sm:$0xff] }
 0x163   : > { %1851 = vmatpush3.msra.mxu0 %v629_v44  ;;  %1885 = vmatpush3.msra.mxu1 %v663_v45  ;;  %v729_v44 = vld [vmem:[#allocation8 + $0x850] sm:$0xff]  ;;  %v710_v45 = vld [vmem:[#allocation8 + $0x7b8] sm:$0xff] }
 0x164   : > { %1852 = vmatprep.subr.mxu0 %v644_v46  ;;  %1886 = vmatprep.subr.mxu1 %v678_v47  ;;  %v744_v46 = vld [vmem:[#allocation8 + $0x8c8] sm:$0xff] }
 0x165   : > { %1853 = vmatpush3.msra.mxu0 %v628_v48  ;;  %1887 = vmatpush3.msra.mxu1 %v662_v49  ;;  %v728_v47 = vld [vmem:[#allocation8 + $0x848] sm:$0xff]  ;;  %v709_v48 = vld [vmem:[#allocation8 + $0x7b0] sm:$0xff]  ;;  %v743_v49 = vld [vmem:[#allocation8 + $0x8c0] sm:$0xff] }
 0x166   : > { %1854 = vmatprep.subr.mxu0 %v643_v50  ;;  %1888 = vmatprep.subr.mxu1 %v677_v51  ;;  %v693_v50 = vld [vmem:[#allocation8 + $0x730] sm:$0xff]  ;;  %v727_v51 = vld [vmem:[#allocation8 + $0x840] sm:$0xff] }
 0x167   : > { %1855 = vmatpush3.msra.mxu0 %v627_v52  ;;  %1889 = vmatpush3.msra.mxu1 %v661_v53  ;;  %v708_v52 = vld [vmem:[#allocation8 + $0x7a8] sm:$0xff]  ;;  %v742_v53 = vld [vmem:[#allocation8 + $0x8b8] sm:$0xff] }
 0x168   : > { %1856 = vmatprep.subr.mxu0 %v642_v54  ;;  %1890 = vmatprep.subr.mxu1 %v676_v55  ;;  %v692_v54 = vld [vmem:[#allocation8 + $0x728] sm:$0xff]  ;;  %v726_v55 = vld [vmem:[#allocation8 + $0x838] sm:$0xff] }
 0x169   : > { %1857 = vmatpush3.msra.mxu0 %v626_v57  ;;  %1891 = vmatpush3.msra.mxu1 %v660_v58  ;;  %v707_v57 = vld [vmem:[#allocation8 + $0x7a0] sm:$0xff]  ;;  %v741_v58 = vld [vmem:[#allocation8 + $0x8b0] sm:$0xff] }
 0x16a   : > { %1858 = vmatprep.subr.mxu0 %v641_v59  ;;  %1892 = vmatprep.subr.mxu1 %v675_v60  ;;  %v691_v59 = vld [vmem:[#allocation8 + $0x720] sm:$0xff]  ;;  %v725_v60 = vld [vmem:[#allocation8 + $0x830] sm:$0xff] }
 0x16b   : > { %1859 = vmatpush3.msra.mxu0 %v625_v62  ;;  %1893 = vmatpush3.msra.mxu1 %v659_v63  ;;  %v706_v62 = vld [vmem:[#allocation8 + $0x798] sm:$0xff]  ;;  %v740_v63 = vld [vmem:[#allocation8 + $0x8a8] sm:$0xff] }
 0x16c   : > { %1860 = vmatprep.subr.mxu0 %v640_v0  ;;  %1894 = vmatprep.subr.mxu1 %v674_v2  ;;  %v690_v0 = vld [vmem:[#allocation8 + $0x718] sm:$0xff]  ;;  %v724_v2 = vld [vmem:[#allocation8 + $0x828] sm:$0xff] }
 0x16d   : > { %1861 = vmatpush3.msra.mxu0 %v624_v3  ;;  %1895 = vmatpush3.msra.mxu1 %v658_v4  ;;  %v705_v3 = vld [vmem:[#allocation8 + $0x790] sm:$0xff]  ;;  %v739_v4 = vld [vmem:[#allocation8 + $0x8a0] sm:$0xff] }
 0x16e   : > { %1862 = vmatprep.subr.mxu0 %v639_v5  ;;  %1896 = vmatprep.subr.mxu1 %v673_v6  ;;  %v689_v5 = vld [vmem:[#allocation8 + $0x710] sm:$0xff]  ;;  %v723_v6 = vld [vmem:[#allocation8 + $0x820] sm:$0xff] }
 0x16f   : > { %1863 = vmatpush3.msra.mxu0 %v623_v9  ;;  %1897 = vmatpush3.msra.mxu1 %v657_v11  ;;  %v704_v9 = vld [vmem:[#allocation8 + $0x788] sm:$0xff]  ;;  %v738_v11 = vld [vmem:[#allocation8 + $0x898] sm:$0xff] }
 0x170   : > { %1207 = vmatmul.mubr.f32.vlgmr.msra.gmra.mxu0 %v2331_v7  ;;  %1898 = vmatprep.subr.mxu1 %v672_v12  ;;  %v734_v7 = vld [vmem:[#allocation8 + $0x878] sm:$0xff]  ;;  %v688_v12 = vld [vmem:[#allocation8 + $0x708] sm:$0xff] }
 0x171   : > { %1908 = vmatprep.subr.mxu0 %v718_v13  ;;  %1211 = vmatprep.mubr.f32.mxu0 %v394_v17  ;;  %v722_v13 = vld [vmem:[#allocation8 + $0x818] sm:$0xff]  ;;  %v687_v17 = vld [vmem:[#allocation8 + $0x700] sm:$0xff] }
 0x172   : > { %1899 = vmatpush3.msra.mxu1 %v656_v14  ;;  %1909 = vmatpush3.msra.mxu0 %v702_v15  ;;  %v703_v14 = vld [vmem:[#allocation8 + $0x780] sm:$0xff]  ;;  %v737_v15 = vld [vmem:[#allocation8 + $0x890] sm:$0xff] }
 0x173   : > { %1900 = vmatprep.subr.mxu1 %v671_v18  ;;  %1910 = vmatprep.subr.mxu0 %v717_v20  ;;  %v721_v18 = vld [vmem:[#allocation8 + $0x810] sm:$0xff]  ;;  %v736_v20 = vld [vmem:[#allocation8 + $0x888] sm:$0xff] }
 0x174   : > { %1901 = vmatpush3.msra.mxu1 %v655_v21  ;;  %1911 = vmatpush3.msra.mxu0 %v701_v22  ;;  %v766_v21 = vld [vmem:[#allocation8 + $0x978] sm:$0xff]  ;;  %v720_v22 = vld [vmem:[#allocation8 + $0x808] sm:$0xff] }
 0x175   : > { %1212 = vmatmul.mubr.f32.gmra.mxu0 %v2354_v25  ;;  %1282 = vmatmul.mubr.f32.vlgmr.msra.gmra.mxu1 %v2337_v19  ;;  %v398_v19 = vld [vmem:[#allocation2 + $0x1b] sm:$0xff] }
 0x176   : > { %1912 = vmatprep.subr.mxu0 %v716_v23  ;;  %1946 = vmatprep.subr.mxu1 %v750_v24  ;;  %v410_v23 = vld [vmem:[#allocation2 + $0x1e] sm:$0xff]  ;;  %v735_v24 = vld [vmem:[#allocation8 + $0x880] sm:$0xff] }
 0x177   : > { %1286 = vmatprep.mubr.f32.mxu1 %v402_v27  ;;  %1913 = vmatpush3.msra.mxu0 %v700_v26  ;;  %v765_v26 = vld [vmem:[#allocation8 + $0x970] sm:$0xff]  ;;  %v764_v27 = vld [vmem:[#allocation8 + $0x968] sm:$0xff] }
 0x178   : > { %1356 = vmatprep.mubr.f32.mxu0 %v2340_v8  ;;  %1947 = vmatpush3.msra.mxu1 %v734_v7  ;;  %v712_v8 = vld [vmem:[#allocation8 + $0x7c8] sm:$0xff]  ;;  %v719_v7 = vld [vmem:[#allocation8 + $0x800] sm:$0xff] }
 0x179   : > { %1914 = vmatprep.subr.mxu0 %v715_v28  ;;  %1948 = vmatprep.subr.mxu1 %v749_v29  ;;  %v406_v28 = vld [vmem:[#allocation2 + $0x1d] sm:$0xff]  ;;  %v763_v29 = vld [vmem:[#allocation8 + $0x960] sm:$0xff] }
 0x17a   : > { %1915 = vmatpush3.msra.mxu0 %v699_v30  ;;  %1949 = vmatpush3.msra.mxu1 %v733_v1  ;;  %v762_v30 = vld [vmem:[#allocation8 + $0x958] sm:$0xff]  ;;  %v414_v1 = vld [vmem:[#allocation2 + $0x1f] sm:$0xff] }
 0x17b   : > { %1287 = vmatmul.mubr.f32.gmra.mxu1 %v398_v19  ;;  %1916 = vmatprep.subr.mxu0 %v714_v31  ;;  %v761_v31 = vld [vmem:[#allocation8 + $0x950] sm:$0xff]  ;;  %v756_v19 = vld [vmem:[#allocation8 + $0x928] sm:$0xff] }
 0x17c   : > { %1950 = vmatprep.subr.mxu1 %v748_v32  ;;  %1917 = vmatpush3.msra.mxu0 %v698_v33  ;;  %v760_v32 = vld [vmem:[#allocation8 + $0x948] sm:$0xff]  ;;  %v759_v33 = vld [vmem:[#allocation8 + $0x940] sm:$0xff] }
 0x17d   : > { %1951 = vmatpush3.msra.mxu1 %v732_v34  ;;  %1431 = vmatprep.mubr.f32.mxu1 %v2322_v56  ;;  %v694_v56 = vld [vmem:[#allocation8 + $0x738] sm:$0xff]  ;;  %v755_v34 = vld [vmem:[#allocation8 + $0x920] sm:$0xff] }
 0x17e   : > { %1918 = vmatprep.subr.mxu0 %v713_v35  ;;  %1952 = vmatprep.subr.mxu1 %v747_v36  ;;  %v754_v35 = vld [vmem:[#allocation8 + $0x918] sm:$0xff]  ;;  %v753_v36 = vld [vmem:[#allocation8 + $0x910] sm:$0xff] }
 0x17f   : > { %1919 = vmatpush3.msra.mxu0 %v697_v37  ;;  %1953 = vmatpush3.msra.mxu1 %v731_v38  ;;  %v752_v37 = vld [vmem:[#allocation8 + $0x908] sm:$0xff]  ;;  %v751_v38 = vld [vmem:[#allocation8 + $0x900] sm:$0xff] }
 0x180   : > { %1920 = vmatprep.subr.mxu0 %v712_v8  ;;  %1954 = vmatprep.subr.mxu1 %v746_v39  ;;  %v422_v8 = vld [vmem:[#allocation2 + $0x21] sm:$0xff]  ;;  %v1674_v39 = vpop.f32.mrf.mxu1 }
 0x181   : > { %1921 = vmatpush3.msra.mxu0 %v696_v40  ;;  %1955 = vmatpush3.msra.mxu1 %v730_v10 }
 0x182   : > { %1922 = vmatprep.subr.mxu0 %v711_v41  ;;  %1956 = vmatprep.subr.mxu1 %v745_v42  ;;  %v1675_v40 = vpop.f32.mrf.mxu1 }
 0x183   : > { %1923 = vmatpush3.msra.mxu0 %v695_v43  ;;  %1957 = vmatpush3.msra.mxu1 %v729_v44 }
 0x184   : > { %1924 = vmatprep.subr.mxu0 %v710_v45  ;;  %1958 = vmatprep.subr.mxu1 %v744_v46 }
 0x185   : > { %1925 = vmatpush3.msra.mxu0 %v694_v56  ;;  %1959 = vmatpush3.msra.mxu1 %v728_v47 }
 0x186   : > { %1926 = vmatprep.subr.mxu0 %v709_v48  ;;  %1960 = vmatprep.subr.mxu1 %v743_v49 }
 0x187   : > { %1927 = vmatpush3.msra.mxu0 %v693_v50  ;;  %1961 = vmatpush3.msra.mxu1 %v727_v51 }
 0x188   : > { %1928 = vmatprep.subr.mxu0 %v708_v52  ;;  %1962 = vmatprep.subr.mxu1 %v742_v53 }
 0x189   : > { %1929 = vmatpush3.msra.mxu0 %v692_v54  ;;  %1963 = vmatpush3.msra.mxu1 %v726_v55 }
 0x18a   : > { %1930 = vmatprep.subr.mxu0 %v707_v57  ;;  %1964 = vmatprep.subr.mxu1 %v741_v58 }
 0x18b   : > { %1931 = vmatpush3.msra.mxu0 %v691_v59  ;;  %1965 = vmatpush3.msra.mxu1 %v725_v60 }
 0x18c   : > { %1932 = vmatprep.subr.mxu0 %v706_v62  ;;  %1966 = vmatprep.subr.mxu1 %v740_v63  ;;  %v1676_v62 = vadd.f32 %v1675_v40, %v1674_v39 }
 0x18d   : > { %1933 = vmatpush3.msra.mxu0 %v690_v0  ;;  %1967 = vmatpush3.msra.mxu1 %v724_v2 }
 0x18e   : > { %1934 = vmatprep.subr.mxu0 %v705_v3  ;;  %1968 = vmatprep.subr.mxu1 %v739_v4 }
 0x18f   : > { %1935 = vmatpush3.msra.mxu0 %v689_v5  ;;  %1969 = vmatpush3.msra.mxu1 %v723_v6  ;;  %v2115_v5 = vld [vmem:[#allocation2 + $0x10] sm:$0xff] }
 0x190   : > { %1936 = vmatprep.subr.mxu0 %v704_v9  ;;  %1970 = vmatprep.subr.mxu1 %v738_v11  ;;  %v834_v6 = vadd.f32 %v2115_v5, %v1676_v62 }
 0x191   : > { %1937 = vmatpush3.msra.mxu0 %v688_v12  ;;  %1971 = vmatpush3.msra.mxu1 %v722_v13  ;;  %v2116_v12 = vld [vmem:[#allocation2 + $0x18] sm:$0xff] }
 0x192   : > { %1938 = vmatprep.subr.mxu0 %v703_v14  ;;  %1972 = vmatprep.subr.mxu1 %v737_v15 }
 0x193   : > { %1939 = vmatpush3.msra.mxu0 %v687_v17  ;;  %1973 = vmatpush3.msra.mxu1 %v721_v18 }
 0x194   : > { %1357 = vmatmul.mubr.f32.vlgmr.msra.gmra.mxu0 %v2343_v16  ;;  %1974 = vmatprep.subr.mxu1 %v736_v20  ;;  %v2114_v16 = vld [vmem:[#allocation2 + $0x8] sm:$0xff] }
 0x195   : > { %2037 = vmatprep.subr.mxu0 %v766_v21  ;;  %1361 = vmatprep.mubr.f32.mxu0 %v410_v23 }
 0x196   : > { %1975 = vmatpush3.msra.mxu1 %v720_v22  ;;  %2038 = vmatpush3.msra.mxu0 %v766_v21 }
 0x197   : > { %1976 = vmatprep.subr.mxu1 %v735_v24  ;;  %2039 = vmatprep.subr.mxu0 %v765_v26 }
 0x198   : > { %1977 = vmatpush3.msra.mxu1 %v719_v7  ;;  %2040 = vmatpush3.msra.mxu0 %v765_v26 }
 0x199   : > { %1362 = vmatmul.mubr.f32.gmra.mxu0 %v406_v28  ;;  %1432 = vmatmul.mubr.f32.vlgmr.msra.gmra.mxu1 %v2349_v61  ;;  %v758_v61 = vld [vmem:[#allocation8 + $0x938] sm:$0xff] }
 0x19a   : > { %2041 = vmatprep.subr.mxu0 %v764_v27  ;;  %2069 = vmatprep.mubr.f32.mxu0 %v2354_v25  ;;  %v757_v25 = vld [vmem:[#allocation8 + $0x930] sm:$0xff] }
 0x19b   : > { %2042 = vmatpush3.msra.mxu0 %v764_v27  ;;  %1436 = vmatprep.mubr.f32.mxu1 %v2114_v16 }
 0x19c   : > { %2043 = vmatprep.subr.mxu0 %v763_v29 }
 0x19d   : > { %2044 = vmatpush3.msra.mxu0 %v763_v29  ;;  %1437 = vmatmul.mubr.f32.gmra.mxu1 %v414_v1 }
 0x19e   : > { %2045 = vmatprep.subr.mxu0 %v762_v30 }
 0x19f   : > { %2046 = vmatpush3.msra.mxu0 %v762_v30 }
 0x1a0   : > { %2047 = vmatprep.subr.mxu0 %v761_v31 }
 0x1a1   : > { %2048 = vmatpush3.msra.mxu0 %v761_v31 }
 0x1a2   : > { %2049 = vmatprep.subr.mxu0 %v760_v32 }
 0x1a3   : > { %2050 = vmatpush3.msra.mxu0 %v760_v32 }
 0x1a4   : > { %2051 = vmatprep.subr.mxu0 %v759_v33 }
 0x1a5   : > { %2052 = vmatpush3.msra.mxu0 %v759_v33 }
 0x1a6   : > { %2053 = vmatprep.subr.mxu0 %v758_v61 }
 0x1a7   : > { %2054 = vmatpush3.msra.mxu0 %v758_v61 }
 0x1a8   : > { %2055 = vmatprep.subr.mxu0 %v757_v25 }
 0x1a9   : > { %2056 = vmatpush3.msra.mxu0 %v757_v25 }
 0x1aa   : > { %2057 = vmatprep.subr.mxu0 %v756_v19 }
 0x1ab   : > { %2058 = vmatpush3.msra.mxu0 %v756_v19 }
 0x1ac   : > { %2059 = vmatprep.subr.mxu0 %v755_v34 }
 0x1ad   : > { %2060 = vmatpush3.msra.mxu0 %v755_v34 }
 0x1ae   : > { %2061 = vmatprep.subr.mxu0 %v754_v35 }
 0x1af   : > { %2062 = vmatpush3.msra.mxu0 %v754_v35 }
 0x1b0   : > { %2063 = vmatprep.subr.mxu0 %v753_v36 }
 0x1b1   : > { %2064 = vmatpush3.msra.mxu0 %v753_v36 }
 0x1b2   : > { %2065 = vmatprep.subr.mxu0 %v752_v37 }
 0x1b3   : > { %2066 = vmatpush3.msra.mxu0 %v752_v37 }
 0x1b4   : > { %2067 = vmatprep.subr.mxu0 %v751_v38 }
 0x1b5   : > { %2068 = vmatpush3.msra.mxu0 %v751_v38 }
 0x1b6   : > { %2070 = vmatmul.mubr.f32.vlgmr.msra.gmra.mxu0 %v422_v8 }
 0x1e9   : > { %v1677_v10 = vpop.f32.mrf.mxu1 }
 0x1ea   : > { %v1712_v41 = vpop.f32.mrf.mxu0 }
 0x1eb   : > { %v1678_v42 = vpop.f32.mrf.mxu1 }
 0x1ec   : > { %v1713_v43 = vpop.f32.mrf.mxu0  ;;  %v1679_v2 = vadd.f32 %v1678_v42, %v1677_v10 }
 0x1ed   : > { %v1750_v44 = vpop.f32.mrf.mxu1  ;;  %v1714_v3 = vadd.f32 %v1713_v43, %v1712_v41 }
 0x1ee   : > { %v1715_v45 = vpop.f32.mrf.mxu0  ;;  %v839_v13 = vadd.f32 %v2116_v12, %v1679_v2 }
 0x1ef   : > { %v1751_v46 = vpop.f32.mrf.mxu1  ;;  %v909_v14 = vadd.f32 %v1714_v3, %v834_v6 }
 0x1f0   : > { %v1716_v56 = vpop.f32.mrf.mxu0  ;;  %v1752_v15 = vadd.f32 %v1751_v46, %v1750_v44 }
 0x1f1   : > { %v1717_v4 = vadd.f32 %v1716_v56, %v1715_v45 }
 0x1f2   : > { %v984_v24 = vadd.f32 %v1752_v15, %v909_v14 }
 0x1f3   : > { %v914_v18 = vadd.f32 %v1717_v4, %v839_v13 }
 0x1f4   : > { %v1753_v47 = vpop.f32.mrf.mxu1 }
 0x1f6   : > { %v1754_v49 = vpop.f32.mrf.mxu1 }
 0x1f7   : > { %v1755_v20 = vadd.f32 %v1754_v49, %v1753_v47 }
 0x1f9   : > { %v989_v27 = vadd.f32 %v1755_v20, %v914_v18 }
 0x20c   : > { %v1788_v48 = vpop.f32.mrf.mxu0 }
 0x20e   : > { %v1789_v50 = vpop.f32.mrf.mxu0 }
 0x20f   : > { %v1790_v21 = vadd.f32 %v1789_v50, %v1788_v48 }
 0x211   : > { %v1826_v51 = vpop.f32.mrf.mxu1  ;;  %v1791_v52 = vpop.f32.mrf.mxu0  ;;  %v1059_v28 = vadd.f32 %v1790_v21, %v984_v24 }
 0x213   : > { %v1827_v53 = vpop.f32.mrf.mxu1  ;;  %v1792_v54 = vpop.f32.mrf.mxu0 }
 0x214   : > { %v1793_v23 = vadd.f32 %v1792_v54, %v1791_v52  ;;  %v1828_v29 = vadd.f32 %v1827_v53, %v1826_v51 }
 0x216   : > { %v1064_v16 = vadd.f32 %v1793_v23, %v989_v27  ;;  %v1134_v61 = vadd.f32 %v1828_v29, %v1059_v28 }
 0x217   : > { %v1829_v55 = vpop.f32.mrf.mxu1 }
 0x219   : > { %v1830_v58 = vpop.f32.mrf.mxu1 }
 0x21a   : > { %v1831_v30 = vadd.f32 %v1830_v58, %v1829_v55 }
 0x21c   : > { %v1139_v25 = vadd.f32 %v1831_v30, %v1064_v16 }
 0x230   : > { %v1864_v57 = vpop.f32.mrf.mxu0 }
 0x232   : > { %v1865_v59 = vpop.f32.mrf.mxu0 }
 0x233   : > { %v1866_v1 = vadd.f32 %v1865_v59, %v1864_v57 }
 0x235   : > { %v1902_v60 = vpop.f32.mrf.mxu1  ;;  %v1867_v63 = vpop.f32.mrf.mxu0  ;;  %v1209_v19 = vadd.f32 %v1866_v1, %v1134_v61 }
 0x237   : > { %v1903_v0 = vpop.f32.mrf.mxu1  ;;  %v1868_v9 = vpop.f32.mrf.mxu0 }
 0x238   : > { %v1869_v33 = vadd.f32 %v1868_v9, %v1867_v63  ;;  %v1904_v34 = vadd.f32 %v1903_v0, %v1902_v60 }
 0x23a   : > { %v1214_v37 = vadd.f32 %v1869_v33, %v1139_v25  ;;  %v1284_v40 = vadd.f32 %v1904_v34, %v1209_v19 }
 0x23b   : > { %v1905_v11 = vpop.f32.mrf.mxu1 }
 0x23d   : > { %v1906_v22 = vpop.f32.mrf.mxu1 }
 0x23e   : > { %v1907_v38 = vadd.f32 %v1906_v22, %v1905_v11 }
 0x240   : > { %v1289_v41 = vadd.f32 %v1907_v38, %v1214_v37 }
 0x254   : > { %v1940_v17 = vpop.f32.mrf.mxu0 }
 0x256   : > { %v1941_v26 = vpop.f32.mrf.mxu0 }
 0x257   : > { %v1942_v8 = vadd.f32 %v1941_v26, %v1940_v17 }
 0x259   : > { %v1978_v7 = vpop.f32.mrf.mxu1  ;;  %v1943_v31 = vpop.f32.mrf.mxu0  ;;  %v1359_v42 = vadd.f32 %v1942_v8, %v1284_v40 }
 0x25b   : > { %v1979_v32 = vpop.f32.mrf.mxu1  ;;  %v1944_v35 = vpop.f32.mrf.mxu0 }
 0x25c   : > { %v1945_v39 = vadd.f32 %v1944_v35, %v1943_v31  ;;  %v1980_v43 = vadd.f32 %v1979_v32, %v1978_v7 }
 0x25d   : > { %v1981_v36 = vpop.f32.mrf.mxu1 }
 0x25e   : > { %v1364_v44 = vadd.f32 %v1945_v39, %v1289_v41  ;;  %v1434_v56 = vadd.f32 %v1980_v43, %v1359_v42 }
 0x25f   : > { %v1982_v10 = vpop.f32.mrf.mxu1 }
 0x260   : > { %v1983_v45 = vadd.f32 %v1982_v10, %v1981_v36 }
 0x262   : > { %v1439_v47 = vadd.f32 %v1983_v45, %v1364_v44 }
 0x276   : > { %v2071_v46 = vpop.f32.mrf.mxu0 }
 0x277   : > { %v1514_v50 = vadd.f32 %v2071_v46, %v1439_v47 }
 0x278   : > { %v1508_v48 = vpop.f32.mrf.mxu0 }
 0x279   : > { %v1509_v49 = vadd.f32 %v1508_v48, %v1434_v56  ;;  %1518 = vst [vmem:[%s241_s20 + $0x8] sm:$0xff] %v1514_v50 }
 0x27b   : > { %1517 = vst [vmem:[%s241_s20] sm:$0xff] %v1509_v49 }
 0x27c PF: > { %s16_s15 = sadd.s32 1, %s2209_s15  }
 0x27d   : > { %p13_p6 = scmp.ge.s32.totalorder %s16_s15, 4  }
 0x27f   :  { %15 = sbr.rel (!%p13_p6) target bundleno = 2 (0x2), region = 79 }
 0x284   :  { %1541 = vsyncpa [#allocation5], 1 }
 0x285   :  { %1543 = vsyncpa [#allocation5 + $0x1], 1 }
 0x286   :  { %1544 = vsyncpa [#allocation7], 1 }

</bundles_post_ra>
